<compile_context>
chip_gen: v6e
topology: v6e:2x2x1
jax: 0.10.0
libtpu: 0.0.40
codegen_flags: <defaults>
</compile_context>

<pallas_src>
import jax
import jax.numpy as jnp
from jax.experimental import pallas as pl
from jax.experimental.pallas import tpu as pltpu
import numpy as np

L_IN = 256      # required input length: 256 -> (10, 31) -> 310 flattened features
B_BLK = 32      # examples processed per grid step (multiple of 8; 32 is the sweet spot
                # before the block-diagonal formulation's O(B^2) zero-work dominates)


# ---------------------------------------------------------------------------
# Fused kernel: conv1/pool/relu -> conv2/pool/relu -> conv3/pool/relu -> MLP head
# ---------------------------------------------------------------------------
def cnn_fused_kernel(x_ref,
                     w1a_ref, w1b_ref, b1_ref, cs1_ref,
                     w2a_ref, w2b_ref, b2_ref, cs2_ref,
                     w3a_ref, w3b_ref, b3_ref, cs3_ref,
                     fc1w_ref, fc1b_ref, fc2w_ref, fc2b_ref, fc3w_ref, fc3b_ref,
                     out_ref):
    f32 = jnp.float32

    def conv_pool_relu(h, wa_ref, wb_ref, b_ref, cs_ref):
        # h: (B*Ci, L) with rows ordered b*Ci + ci (batch-on-sublanes layout).
        L = h.shape[1]
        # k=2 "valid" conv as two resident-weight matmuls (no sublane concat).
        y = (jnp.dot(wa_ref[...], h[:, :L - 1], preferred_element_type=f32)
             + jnp.dot(wb_ref[...], h[:, 1:L], preferred_element_type=f32)
             + b_ref[...])                                   # (B*O, L-1)
        # Channel half of the 2x2 max-pool first: host-side row permutation put the even
        # pool members in the top half and the odd members in the bottom half, so this is
        # one contiguous sublane slice + one VPU max (no selection matmuls).
        half = y.shape[0] // 2
        cm = jnp.maximum(y[:half, :], y[half:, :])           # (B*Co, L-1)
        # Length half of the pool: pairwise max, then keep even columns via the hoisted
        # 0/1 decimation matrix (constant, resident in VMEM across grid steps).
        pm = jnp.maximum(cm[:, :L - 2], cm[:, 1:L - 1])      # (B*Co, L-2)
        pooled = jnp.dot(pm, cs_ref[...], preferred_element_type=f32)   # (B*Co, Lo)
        return jnp.maximum(pooled, 0.0)                      # relu(pool(conv))

    h = conv_pool_relu(x_ref[...], w1a_ref, w1b_ref, b1_ref, cs1_ref)   # (5B, 127)
    h = conv_pool_relu(h, w2a_ref, w2b_ref, b2_ref, cs2_ref)            # (10B, 63)
    # layer-3 weights are row-permuted to head order: output rows are c*B + b
    z = conv_pool_relu(h, w3a_ref, w3b_ref, b3_ref, cs3_ref)            # (10B, 31)

    B = out_ref.shape[0]
    # fc1 with the flatten folded in: out[b, j] = sum_{c,l} z[c*B+b, l] * W1[c*31+l, j]
    fc1w = fc1w_ref[...]                                     # (310, 128), hoisted read
    acc = fc1b_ref[...]                                      # (1, 128) -> broadcasts
    for c in range(10):
        acc = acc + jnp.dot(z[c * B:(c + 1) * B, :],
                            fc1w[c * 31:(c + 1) * 31, :],
                            preferred_element_type=f32)      # (B, 128)
    h1 = jnp.maximum(acc, 0.0)
    h2 = jnp.maximum(jnp.dot(h1, fc2w_ref[...], preferred_element_type=f32)
                     + fc2b_ref[...], 0.0)                   # (B, 20)
    # TODO(synk): output stays (B, 1) (masked narrow store); a lane-dense (1, B) layout
    # needs an in-kernel transpose and was rated a minor win in review.
    out_ref[...] = (jnp.dot(h2, fc3w_ref[...], preferred_element_type=f32)
                    + fc3b_ref[...])                         # (B, 1)


# ---------------------------------------------------------------------------
# Host-side constant construction (row-permuted block-diagonal conv weights,
# length-decimation matrices, padded fc weights)
# ---------------------------------------------------------------------------
def _prepare_kernel_params(p, B):
    f32 = np.float32

    def conv_weight_taps(w, head_order=False):
        # torch (O, Ci, 2) -> two (B*O, B*Ci) block-diagonal matrices (one per tap),
        # rows permuted so even-pool-member channels fill the top B*Co rows and odd
        # members the bottom B*Co rows (ordering b*Co+k, or k*B+b when head_order).
        w = np.asarray(w, f32)
        O, Ci, _ = w.shape
        Co = O // 2
        Wa = np.zeros((B * O, B * Ci), f32)
        Wb = np.zeros((B * O, B * Ci), f32)
        for b in range(B):
            for k in range(Co):
                r = (k * B + b) if head_order else (b * Co + k)
                Wa[r, b * Ci:(b + 1) * Ci] = w[2 * k, :, 0]
                Wa[B * Co + r, b * Ci:(b + 1) * Ci] = w[2 * k + 1, :, 0]
                Wb[r, b * Ci:(b + 1) * Ci] = w[2 * k, :, 1]
                Wb[B * Co + r, b * Ci:(b + 1) * Ci] = w[2 * k + 1, :, 1]
        return Wa, Wb

    def conv_bias(bvec, head_order=False):
        bvec = np.asarray(bvec, f32)
        O = bvec.shape[0]
        Co = O // 2
        out = np.zeros((B * O, 1), f32)
        for b in range(B):
            for k in range(Co):
                r = (k * B + b) if head_order else (b * Co + k)
                out[r, 0] = bvec[2 * k]
                out[B * Co + r, 0] = bvec[2 * k + 1]
        return out

    def col_sel(l_conv):
        # keep even columns of the pairwise length max: (l_conv-1, l_conv//2) 0/1 matrix
        lo = l_conv // 2
        m = np.zeros((l_conv - 1, lo), f32)
        m[2 * np.arange(lo), np.arange(lo)] = 1.0
        return m

    w1a, w1b = conv_weight_taps(p["w1"])
    w2a, w2b = conv_weight_taps(p["w2"])
    w3a, w3b = conv_weight_taps(p["w3"], head_order=True)

    fc1_w = np.zeros((310, 128), f32)
    fc1_w[:, :100] = np.asarray(p["fc1_w"], f32).T      # torch flatten order = c*31 + l
    fc1_b = np.zeros((1, 128), f32)
    fc1_b[0, :100] = np.asarray(p["fc1_b"], f32)
    fc2_w = np.zeros((128, 20), f32)
    fc2_w[:100, :] = np.asarray(p["fc2_w"], f32).T      # padded rows stay zero
    fc2_b = np.asarray(p["fc2_b"], f32).reshape(1, 20)
    fc3_w = np.asarray(p["fc3_w"], f32).T.reshape(20, 1)
    fc3_b = np.asarray(p["fc3_b"], f32).reshape(1, 1)

    return dict(
        w1a=w1a, w1b=w1b, b1=conv_bias(p["b1"]), cs1=col_sel(255),
        w2a=w2a, w2b=w2b, b2=conv_bias(p["b2"]), cs2=col_sel(126),
        w3a=w3a, w3b=w3b, b3=conv_bias(p["b3"], head_order=True), cs3=col_sel(62),
        fc1_w=fc1_w, fc1_b=fc1_b, fc2_w=fc2_w, fc2_b=fc2_b, fc3_w=fc3_w, fc3_b=fc3_b,
    )


def _const_index_map(ndim):
    return lambda n: (0,) * ndim


def _pick_block(n, requested):
    # multiple of 8 for sublane alignment; keep the batch grid >= 2 steps when the batch
    # allows it (so both TensorCores get work on v7x), never below 8.
    req = max(8, (int(requested) // 8) * 8)
    half = (n + 1) // 2
    half8 = ((half + 7) // 8) * 8
    return max(8, min(req, half8))


# ---------------------------------------------------------------------------
# Wrapper
# ---------------------------------------------------------------------------
def cnn_net_forward(x, params, *, block_b=B_BLK):
    N, C, L = x.shape
    assert (C, L) == (2, L_IN), (
        "CnnNet requires input shape (N, 2, 256) so that fc1 sees 310 features")
    B = _pick_block(N, block_b)
    n_pad = (-N) % B
    if n_pad:
        x = jnp.concatenate([x, jnp.zeros((n_pad, C, L), x.dtype)], axis=0)
    Np = N + n_pad
    x2d = x.astype(jnp.float32).reshape(Np * 2, L)       # rows ordered n*2 + c

    k = _prepare_kernel_params(params, B)
    consts = [k["w1a"], k["w1b"], k["b1"], k["cs1"],
              k["w2a"], k["w2b"], k["b2"], k["cs2"],
              k["w3a"], k["w3b"], k["b3"], k["cs3"],
              k["fc1_w"], k["fc1_b"], k["fc2_w"], k["fc2_b"], k["fc3_w"], k["fc3_b"]]

    # Constant index_map -> the blocks stay resident in VMEM across grid steps.
    const_specs = [pl.BlockSpec(a.shape, _const_index_map(a.ndim)) for a in consts]

    out = pl.pallas_call(
        cnn_fused_kernel,
        out_shape=jax.ShapeDtypeStruct((Np, 1), jnp.float32),
        grid=(Np // B,),
        in_specs=[pl.BlockSpec((2 * B, L), lambda n: (n, 0))] + const_specs,
        out_specs=pl.BlockSpec((B, 1), lambda n: (n, 0)),
        compiler_params=pltpu.CompilerParams(
            dimension_semantics=("parallel",),
            # v5e's default scoped VMEM is 16 MiB; constants at B=32 are ~3 MiB
            # (double-buffered ~6 MiB), so 32 MiB gives headroom on every generation
            # while staying under v7x's 64 MiB physical VMEM.
            vmem_limit_bytes=32 * 1024 * 1024),
    )(x2d, *[jnp.asarray(a) for a in consts])
    return out[:N]


# ---------------------------------------------------------------------------
# Deterministic parameter init (PyTorch-default-style uniform bounds, torch layouts)
# ---------------------------------------------------------------------------
def init_params(key):
    ks = jax.random.split(key, 12)

    def u(k, shape, fan_in):
        bound = 1.0 / np.sqrt(fan_in)
        return jax.random.uniform(k, shape, jnp.float32, -bound, bound)

    return dict(
        w1=u(ks[0], (10, 2, 2), 4),      b1=u(ks[1], (10,), 4),
        w2=u(ks[2], (20, 5, 2), 10),     b2=u(ks[3], (20,), 10),
        w3=u(ks[4], (20, 10, 2), 20),    b3=u(ks[5], (20,), 20),
        fc1_w=u(ks[6], (100, 310), 310), fc1_b=u(ks[7], (100,), 310),
        fc2_w=u(ks[8], (20, 100), 100),  fc2_b=u(ks[9], (20,), 100),
        fc3_w=u(ks[10], (1, 20), 20),    fc3_b=u(ks[11], (1,), 20),
    )


# ---------------------------------------------------------------------------
# Pure-JAX reference (independent implementation, for verification)
# ---------------------------------------------------------------------------
def reference_forward(x, p):
    def conv_k2(h, w, b):
        L = h.shape[-1]
        return (jnp.einsum('oc,ncl->nol', w[:, :, 0], h[:, :, :L - 1])
                + jnp.einsum('oc,ncl->nol', w[:, :, 1], h[:, :, 1:L])
                + b[None, :, None])

    def pool(h):  # F.max_pool2d(., 2) over the (conv-channel, length) plane, floor mode
        N, C, L = h.shape
        Co, Lo = C // 2, L // 2
        return h[:, :2 * Co, :2 * Lo].reshape(N, Co, 2, Lo, 2).max(axis=(2, 4))

    h = jax.nn.relu(pool(conv_k2(x, p["w1"], p["b1"])))
    h = jax.nn.relu(pool(conv_k2(h, p["w2"], p["b2"])))
    h = jax.nn.relu(pool(conv_k2(h, p["w3"], p["b3"])))
    h = h.reshape(h.shape[0], -1)
    h = jax.nn.relu(h @ p["fc1_w"].T + p["fc1_b"])
    h = jax.nn.relu(h @ p["fc2_w"].T + p["fc2_b"])
    return h @ p["fc3_w"].T + p["fc3_b"]


if __name__ == "__main__":
    key = jax.random.PRNGKey(0)
    kp, kx = jax.random.split(key)
    params = init_params(kp)
    x = jax.random.normal(kx, (2, 2, L_IN), jnp.float32)   # (batch=2, C=2, L=256)

    out = jax.block_until_ready(cnn_net_forward(x, params))
    ref = reference_forward(x, params)
    assert out.shape == (2, 1), out.shape
    if not jnp.allclose(out, ref, atol=1e-4, rtol=1e-4):
        raise SystemExit(f"mismatch:\n{out}\nvs\n{ref}")
    print("KERNEL_OK")
</pallas_src>

<mosaic_0001>
module attributes {stable_mosaic.version = 11 : i64} {
  func.func @cnn_fused_kernel(%arg0: i32, %arg1: memref<16x256xf32, #tpu.memory_space<vmem>>, %arg2: memref<80x16xf32, #tpu.memory_space<vmem>>, %arg3: memref<80x16xf32, #tpu.memory_space<vmem>>, %arg4: memref<80x1xf32, #tpu.memory_space<vmem>>, %arg5: memref<254x127xf32, #tpu.memory_space<vmem>>, %arg6: memref<160x40xf32, #tpu.memory_space<vmem>>, %arg7: memref<160x40xf32, #tpu.memory_space<vmem>>, %arg8: memref<160x1xf32, #tpu.memory_space<vmem>>, %arg9: memref<125x63xf32, #tpu.memory_space<vmem>>, %arg10: memref<160x80xf32, #tpu.memory_space<vmem>>, %arg11: memref<160x80xf32, #tpu.memory_space<vmem>>, %arg12: memref<160x1xf32, #tpu.memory_space<vmem>>, %arg13: memref<61x31xf32, #tpu.memory_space<vmem>>, %arg14: memref<310x128xf32, #tpu.memory_space<vmem>>, %arg15: memref<1x128xf32, #tpu.memory_space<vmem>>, %arg16: memref<128x20xf32, #tpu.memory_space<vmem>>, %arg17: memref<1x20xf32, #tpu.memory_space<vmem>>, %arg18: memref<20x1xf32, #tpu.memory_space<vmem>>, %arg19: memref<1x1xf32, #tpu.memory_space<vmem>>, %arg20: memref<8x1xf32, #tpu.memory_space<vmem>>) attributes {dimension_semantics = [#tpu.dimension_semantics<parallel>], iteration_bounds = array<i64: 1>, scalar_prefetch = 0 : i64, scratch_operands = 0 : i64, tpu.core_type = #tpu.core_type<tc>, window_params = [{transform_indices = @transform_0, window_bounds = array<i64: 16, 256>}, {pipeline_mode = #tpu.pipeline_mode<synchronous>, transform_indices = @transform_1, window_bounds = array<i64: 80, 16>}, {pipeline_mode = #tpu.pipeline_mode<synchronous>, transform_indices = @transform_2, window_bounds = array<i64: 80, 16>}, {pipeline_mode = #tpu.pipeline_mode<synchronous>, transform_indices = @transform_3, window_bounds = array<i64: 80, 1>}, {pipeline_mode = #tpu.pipeline_mode<synchronous>, transform_indices = @transform_4, window_bounds = array<i64: 254, 127>}, {pipeline_mode = #tpu.pipeline_mode<synchronous>, transform_indices = @transform_5, window_bounds = array<i64: 160, 40>}, {pipeline_mode = #tpu.pipeline_mode<synchronous>, transform_indices = @transform_6, window_bounds = array<i64: 160, 40>}, {pipeline_mode = #tpu.pipeline_mode<synchronous>, transform_indices = @transform_7, window_bounds = array<i64: 160, 1>}, {pipeline_mode = #tpu.pipeline_mode<synchronous>, transform_indices = @transform_8, window_bounds = array<i64: 125, 63>}, {pipeline_mode = #tpu.pipeline_mode<synchronous>, transform_indices = @transform_9, window_bounds = array<i64: 160, 80>}, {pipeline_mode = #tpu.pipeline_mode<synchronous>, transform_indices = @transform_10, window_bounds = array<i64: 160, 80>}, {pipeline_mode = #tpu.pipeline_mode<synchronous>, transform_indices = @transform_11, window_bounds = array<i64: 160, 1>}, {pipeline_mode = #tpu.pipeline_mode<synchronous>, transform_indices = @transform_12, window_bounds = array<i64: 61, 31>}, {pipeline_mode = #tpu.pipeline_mode<synchronous>, transform_indices = @transform_13, window_bounds = array<i64: 310, 128>}, {pipeline_mode = #tpu.pipeline_mode<synchronous>, transform_indices = @transform_14, window_bounds = array<i64: 1, 128>}, {pipeline_mode = #tpu.pipeline_mode<synchronous>, transform_indices = @transform_15, window_bounds = array<i64: 128, 20>}, {pipeline_mode = #tpu.pipeline_mode<synchronous>, transform_indices = @transform_16, window_bounds = array<i64: 1, 20>}, {pipeline_mode = #tpu.pipeline_mode<synchronous>, transform_indices = @transform_17, window_bounds = array<i64: 20, 1>}, {pipeline_mode = #tpu.pipeline_mode<synchronous>, transform_indices = @transform_18, window_bounds = array<i64: 1, 1>}, {transform_indices = @transform_19, window_bounds = array<i64: 8, 1>}]} {
    %c0 = arith.constant 0 : index
    %c0_0 = arith.constant 0 : index
    %0 = vector.load %arg1[%c0, %c0_0] : memref<16x256xf32, #tpu.memory_space<vmem>>, vector<16x256xf32>
    %c0_1 = arith.constant 0 : index
    %c0_2 = arith.constant 0 : index
    %1 = vector.load %arg2[%c0_1, %c0_2] : memref<80x16xf32, #tpu.memory_space<vmem>>, vector<80x16xf32>
    %2 = vector.extract_strided_slice %0 {offsets = [0, 0], sizes = [16, 255], strides = [1, 1]} : vector<16x256xf32> to vector<16x255xf32>
    %cst = arith.constant dense<0.000000e+00> : vector<80x255xf32>
    %3 = tpu.matmul %1, %2, %cst {dimension_numbers = #tpu.dot_dimension_numbers<[1], [0], [0], [1], [0, 0, 1, 1], [], []>} : vector<80x16xf32>, vector<16x255xf32>, vector<80x255xf32> -> vector<80x255xf32>
    %c0_3 = arith.constant 0 : index
    %c0_4 = arith.constant 0 : index
    %4 = vector.load %arg3[%c0_3, %c0_4] : memref<80x16xf32, #tpu.memory_space<vmem>>, vector<80x16xf32>
    %5 = vector.extract_strided_slice %0 {offsets = [0, 1], sizes = [16, 255], strides = [1, 1]} : vector<16x256xf32> to vector<16x255xf32>
    %cst_5 = arith.constant dense<0.000000e+00> : vector<80x255xf32>
    %6 = tpu.matmul %4, %5, %cst_5 {dimension_numbers = #tpu.dot_dimension_numbers<[1], [0], [0], [1], [0, 0, 1, 1], [], []>} : vector<80x16xf32>, vector<16x255xf32>, vector<80x255xf32> -> vector<80x255xf32>
    %7 = arith.addf %3, %6 : vector<80x255xf32>
    %c0_6 = arith.constant 0 : index
    %c0_7 = arith.constant 0 : index
    %8 = vector.load %arg4[%c0_6, %c0_7] : memref<80x1xf32, #tpu.memory_space<vmem>>, vector<80x1xf32>
    %9 = vector.broadcast %8 : vector<80x1xf32> to vector<80x255xf32>
    %10 = arith.addf %7, %9 : vector<80x255xf32>
    %11 = vector.extract_strided_slice %10 {offsets = [0, 0], sizes = [40, 255], strides = [1, 1]} : vector<80x255xf32> to vector<40x255xf32>
    %12 = vector.extract_strided_slice %10 {offsets = [40, 0], sizes = [40, 255], strides = [1, 1]} : vector<80x255xf32> to vector<40x255xf32>
    %13 = arith.maximumf %11, %12 : vector<40x255xf32>
    %14 = vector.extract_strided_slice %13 {offsets = [0, 0], sizes = [40, 254], strides = [1, 1]} : vector<40x255xf32> to vector<40x254xf32>
    %15 = vector.extract_strided_slice %13 {offsets = [0, 1], sizes = [40, 254], strides = [1, 1]} : vector<40x255xf32> to vector<40x254xf32>
    %16 = arith.maximumf %14, %15 : vector<40x254xf32>
    %c0_8 = arith.constant 0 : index
    %c0_9 = arith.constant 0 : index
    %17 = vector.load %arg5[%c0_8, %c0_9] : memref<254x127xf32, #tpu.memory_space<vmem>>, vector<254x127xf32>
    %cst_10 = arith.constant dense<0.000000e+00> : vector<40x127xf32>
    %18 = tpu.matmul %16, %17, %cst_10 {dimension_numbers = #tpu.dot_dimension_numbers<[1], [0], [0], [1], [0, 0, 1, 1], [], []>} : vector<40x254xf32>, vector<254x127xf32>, vector<40x127xf32> -> vector<40x127xf32>
    %cst_11 = arith.constant 0.000000e+00 : f32
    %19 = vector.broadcast %cst_11 : f32 to vector<40x127xf32>
    %20 = arith.maximumf %18, %19 : vector<40x127xf32>
    %c0_12 = arith.constant 0 : index
    %c0_13 = arith.constant 0 : index
    %21 = vector.load %arg6[%c0_12, %c0_13] : memref<160x40xf32, #tpu.memory_space<vmem>>, vector<160x40xf32>
    %22 = vector.extract_strided_slice %20 {offsets = [0, 0], sizes = [40, 126], strides = [1, 1]} : vector<40x127xf32> to vector<40x126xf32>
    %cst_14 = arith.constant dense<0.000000e+00> : vector<160x126xf32>
    %23 = tpu.matmul %21, %22, %cst_14 {dimension_numbers = #tpu.dot_dimension_numbers<[1], [0], [0], [1], [0, 0, 1, 1], [], []>} : vector<160x40xf32>, vector<40x126xf32>, vector<160x126xf32> -> vector<160x126xf32>
    %c0_15 = arith.constant 0 : index
    %c0_16 = arith.constant 0 : index
    %24 = vector.load %arg7[%c0_15, %c0_16] : memref<160x40xf32, #tpu.memory_space<vmem>>, vector<160x40xf32>
    %25 = vector.extract_strided_slice %20 {offsets = [0, 1], sizes = [40, 126], strides = [1, 1]} : vector<40x127xf32> to vector<40x126xf32>
    %cst_17 = arith.constant dense<0.000000e+00> : vector<160x126xf32>
    %26 = tpu.matmul %24, %25, %cst_17 {dimension_numbers = #tpu.dot_dimension_numbers<[1], [0], [0], [1], [0, 0, 1, 1], [], []>} : vector<160x40xf32>, vector<40x126xf32>, vector<160x126xf32> -> vector<160x126xf32>
    %27 = arith.addf %23, %26 : vector<160x126xf32>
    %c0_18 = arith.constant 0 : index
    %c0_19 = arith.constant 0 : index
    %28 = vector.load %arg8[%c0_18, %c0_19] : memref<160x1xf32, #tpu.memory_space<vmem>>, vector<160x1xf32>
    %29 = vector.broadcast %28 : vector<160x1xf32> to vector<160x126xf32>
    %30 = arith.addf %27, %29 : vector<160x126xf32>
    %31 = vector.extract_strided_slice %30 {offsets = [0, 0], sizes = [80, 126], strides = [1, 1]} : vector<160x126xf32> to vector<80x126xf32>
    %32 = vector.extract_strided_slice %30 {offsets = [80, 0], sizes = [80, 126], strides = [1, 1]} : vector<160x126xf32> to vector<80x126xf32>
    %33 = arith.maximumf %31, %32 : vector<80x126xf32>
    %34 = vector.extract_strided_slice %33 {offsets = [0, 0], sizes = [80, 125], strides = [1, 1]} : vector<80x126xf32> to vector<80x125xf32>
    %35 = vector.extract_strided_slice %33 {offsets = [0, 1], sizes = [80, 125], strides = [1, 1]} : vector<80x126xf32> to vector<80x125xf32>
    %36 = arith.maximumf %34, %35 : vector<80x125xf32>
    %c0_20 = arith.constant 0 : index
    %c0_21 = arith.constant 0 : index
    %37 = vector.load %arg9[%c0_20, %c0_21] : memref<125x63xf32, #tpu.memory_space<vmem>>, vector<125x63xf32>
    %cst_22 = arith.constant dense<0.000000e+00> : vector<80x63xf32>
    %38 = tpu.matmul %36, %37, %cst_22 {dimension_numbers = #tpu.dot_dimension_numbers<[1], [0], [0], [1], [0, 0, 1, 1], [], []>} : vector<80x125xf32>, vector<125x63xf32>, vector<80x63xf32> -> vector<80x63xf32>
    %cst_23 = arith.constant 0.000000e+00 : f32
    %39 = vector.broadcast %cst_23 : f32 to vector<80x63xf32>
    %40 = arith.maximumf %38, %39 : vector<80x63xf32>
    %c0_24 = arith.constant 0 : index
    %c0_25 = arith.constant 0 : index
    %41 = vector.load %arg10[%c0_24, %c0_25] : memref<160x80xf32, #tpu.memory_space<vmem>>, vector<160x80xf32>
    %42 = vector.extract_strided_slice %40 {offsets = [0, 0], sizes = [80, 62], strides = [1, 1]} : vector<80x63xf32> to vector<80x62xf32>
    %cst_26 = arith.constant dense<0.000000e+00> : vector<160x62xf32>
    %43 = tpu.matmul %41, %42, %cst_26 {dimension_numbers = #tpu.dot_dimension_numbers<[1], [0], [0], [1], [0, 0, 1, 1], [], []>} : vector<160x80xf32>, vector<80x62xf32>, vector<160x62xf32> -> vector<160x62xf32>
    %c0_27 = arith.constant 0 : index
    %c0_28 = arith.constant 0 : index
    %44 = vector.load %arg11[%c0_27, %c0_28] : memref<160x80xf32, #tpu.memory_space<vmem>>, vector<160x80xf32>
    %45 = vector.extract_strided_slice %40 {offsets = [0, 1], sizes = [80, 62], strides = [1, 1]} : vector<80x63xf32> to vector<80x62xf32>
    %cst_29 = arith.constant dense<0.000000e+00> : vector<160x62xf32>
    %46 = tpu.matmul %44, %45, %cst_29 {dimension_numbers = #tpu.dot_dimension_numbers<[1], [0], [0], [1], [0, 0, 1, 1], [], []>} : vector<160x80xf32>, vector<80x62xf32>, vector<160x62xf32> -> vector<160x62xf32>
    %47 = arith.addf %43, %46 : vector<160x62xf32>
    %c0_30 = arith.constant 0 : index
    %c0_31 = arith.constant 0 : index
    %48 = vector.load %arg12[%c0_30, %c0_31] : memref<160x1xf32, #tpu.memory_space<vmem>>, vector<160x1xf32>
    %49 = vector.broadcast %48 : vector<160x1xf32> to vector<160x62xf32>
    %50 = arith.addf %47, %49 : vector<160x62xf32>
    %51 = vector.extract_strided_slice %50 {offsets = [0, 0], sizes = [80, 62], strides = [1, 1]} : vector<160x62xf32> to vector<80x62xf32>
    %52 = vector.extract_strided_slice %50 {offsets = [80, 0], sizes = [80, 62], strides = [1, 1]} : vector<160x62xf32> to vector<80x62xf32>
    %53 = arith.maximumf %51, %52 : vector<80x62xf32>
    %54 = vector.extract_strided_slice %53 {offsets = [0, 0], sizes = [80, 61], strides = [1, 1]} : vector<80x62xf32> to vector<80x61xf32>
    %55 = vector.extract_strided_slice %53 {offsets = [0, 1], sizes = [80, 61], strides = [1, 1]} : vector<80x62xf32> to vector<80x61xf32>
    %56 = arith.maximumf %54, %55 : vector<80x61xf32>
    %c0_32 = arith.constant 0 : index
    %c0_33 = arith.constant 0 : index
    %57 = vector.load %arg13[%c0_32, %c0_33] : memref<61x31xf32, #tpu.memory_space<vmem>>, vector<61x31xf32>
    %cst_34 = arith.constant dense<0.000000e+00> : vector<80x31xf32>
    %58 = tpu.matmul %56, %57, %cst_34 {dimension_numbers = #tpu.dot_dimension_numbers<[1], [0], [0], [1], [0, 0, 1, 1], [], []>} : vector<80x61xf32>, vector<61x31xf32>, vector<80x31xf32> -> vector<80x31xf32>
    %cst_35 = arith.constant 0.000000e+00 : f32
    %59 = vector.broadcast %cst_35 : f32 to vector<80x31xf32>
    %60 = arith.maximumf %58, %59 : vector<80x31xf32>
    %c0_36 = arith.constant 0 : index
    %c0_37 = arith.constant 0 : index
    %61 = vector.load %arg14[%c0_36, %c0_37] : memref<310x128xf32, #tpu.memory_space<vmem>>, vector<310x128xf32>
    %c0_38 = arith.constant 0 : index
    %c0_39 = arith.constant 0 : index
    %62 = vector.load %arg15[%c0_38, %c0_39] : memref<1x128xf32, #tpu.memory_space<vmem>>, vector<1x128xf32>
    %63 = vector.extract_strided_slice %60 {offsets = [0, 0], sizes = [8, 31], strides = [1, 1]} : vector<80x31xf32> to vector<8x31xf32>
    %64 = vector.extract_strided_slice %61 {offsets = [0, 0], sizes = [31, 128], strides = [1, 1]} : vector<310x128xf32> to vector<31x128xf32>
    %cst_40 = arith.constant dense<0.000000e+00> : vector<8x128xf32>
    %65 = tpu.matmul %63, %64, %cst_40 {dimension_numbers = #tpu.dot_dimension_numbers<[1], [0], [0], [1], [0, 0, 1, 1], [], []>} : vector<8x31xf32>, vector<31x128xf32>, vector<8x128xf32> -> vector<8x128xf32>
    %66 = vector.broadcast %62 : vector<1x128xf32> to vector<8x128xf32>
    %67 = arith.addf %66, %65 : vector<8x128xf32>
    %68 = vector.extract_strided_slice %60 {offsets = [8, 0], sizes = [8, 31], strides = [1, 1]} : vector<80x31xf32> to vector<8x31xf32>
    %69 = vector.extract_strided_slice %61 {offsets = [31, 0], sizes = [31, 128], strides = [1, 1]} : vector<310x128xf32> to vector<31x128xf32>
    %cst_41 = arith.constant dense<0.000000e+00> : vector<8x128xf32>
    %70 = tpu.matmul %68, %69, %cst_41 {dimension_numbers = #tpu.dot_dimension_numbers<[1], [0], [0], [1], [0, 0, 1, 1], [], []>} : vector<8x31xf32>, vector<31x128xf32>, vector<8x128xf32> -> vector<8x128xf32>
    %71 = arith.addf %67, %70 : vector<8x128xf32>
    %72 = vector.extract_strided_slice %60 {offsets = [16, 0], sizes = [8, 31], strides = [1, 1]} : vector<80x31xf32> to vector<8x31xf32>
    %73 = vector.extract_strided_slice %61 {offsets = [62, 0], sizes = [31, 128], strides = [1, 1]} : vector<310x128xf32> to vector<31x128xf32>
    %cst_42 = arith.constant dense<0.000000e+00> : vector<8x128xf32>
    %74 = tpu.matmul %72, %73, %cst_42 {dimension_numbers = #tpu.dot_dimension_numbers<[1], [0], [0], [1], [0, 0, 1, 1], [], []>} : vector<8x31xf32>, vector<31x128xf32>, vector<8x128xf32> -> vector<8x128xf32>
    %75 = arith.addf %71, %74 : vector<8x128xf32>
    %76 = vector.extract_strided_slice %60 {offsets = [24, 0], sizes = [8, 31], strides = [1, 1]} : vector<80x31xf32> to vector<8x31xf32>
    %77 = vector.extract_strided_slice %61 {offsets = [93, 0], sizes = [31, 128], strides = [1, 1]} : vector<310x128xf32> to vector<31x128xf32>
    %cst_43 = arith.constant dense<0.000000e+00> : vector<8x128xf32>
    %78 = tpu.matmul %76, %77, %cst_43 {dimension_numbers = #tpu.dot_dimension_numbers<[1], [0], [0], [1], [0, 0, 1, 1], [], []>} : vector<8x31xf32>, vector<31x128xf32>, vector<8x128xf32> -> vector<8x128xf32>
    %79 = arith.addf %75, %78 : vector<8x128xf32>
    %80 = vector.extract_strided_slice %60 {offsets = [32, 0], sizes = [8, 31], strides = [1, 1]} : vector<80x31xf32> to vector<8x31xf32>
    %81 = vector.extract_strided_slice %61 {offsets = [124, 0], sizes = [31, 128], strides = [1, 1]} : vector<310x128xf32> to vector<31x128xf32>
    %cst_44 = arith.constant dense<0.000000e+00> : vector<8x128xf32>
    %82 = tpu.matmul %80, %81, %cst_44 {dimension_numbers = #tpu.dot_dimension_numbers<[1], [0], [0], [1], [0, 0, 1, 1], [], []>} : vector<8x31xf32>, vector<31x128xf32>, vector<8x128xf32> -> vector<8x128xf32>
    %83 = arith.addf %79, %82 : vector<8x128xf32>
    %84 = vector.extract_strided_slice %60 {offsets = [40, 0], sizes = [8, 31], strides = [1, 1]} : vector<80x31xf32> to vector<8x31xf32>
    %85 = vector.extract_strided_slice %61 {offsets = [155, 0], sizes = [31, 128], strides = [1, 1]} : vector<310x128xf32> to vector<31x128xf32>
    %cst_45 = arith.constant dense<0.000000e+00> : vector<8x128xf32>
    %86 = tpu.matmul %84, %85, %cst_45 {dimension_numbers = #tpu.dot_dimension_numbers<[1], [0], [0], [1], [0, 0, 1, 1], [], []>} : vector<8x31xf32>, vector<31x128xf32>, vector<8x128xf32> -> vector<8x128xf32>
    %87 = arith.addf %83, %86 : vector<8x128xf32>
    %88 = vector.extract_strided_slice %60 {offsets = [48, 0], sizes = [8, 31], strides = [1, 1]} : vector<80x31xf32> to vector<8x31xf32>
    %89 = vector.extract_strided_slice %61 {offsets = [186, 0], sizes = [31, 128], strides = [1, 1]} : vector<310x128xf32> to vector<31x128xf32>
    %cst_46 = arith.constant dense<0.000000e+00> : vector<8x128xf32>
    %90 = tpu.matmul %88, %89, %cst_46 {dimension_numbers = #tpu.dot_dimension_numbers<[1], [0], [0], [1], [0, 0, 1, 1], [], []>} : vector<8x31xf32>, vector<31x128xf32>, vector<8x128xf32> -> vector<8x128xf32>
    %91 = arith.addf %87, %90 : vector<8x128xf32>
    %92 = vector.extract_strided_slice %60 {offsets = [56, 0], sizes = [8, 31], strides = [1, 1]} : vector<80x31xf32> to vector<8x31xf32>
    %93 = vector.extract_strided_slice %61 {offsets = [217, 0], sizes = [31, 128], strides = [1, 1]} : vector<310x128xf32> to vector<31x128xf32>
    %cst_47 = arith.constant dense<0.000000e+00> : vector<8x128xf32>
    %94 = tpu.matmul %92, %93, %cst_47 {dimension_numbers = #tpu.dot_dimension_numbers<[1], [0], [0], [1], [0, 0, 1, 1], [], []>} : vector<8x31xf32>, vector<31x128xf32>, vector<8x128xf32> -> vector<8x128xf32>
    %95 = arith.addf %91, %94 : vector<8x128xf32>
    %96 = vector.extract_strided_slice %60 {offsets = [64, 0], sizes = [8, 31], strides = [1, 1]} : vector<80x31xf32> to vector<8x31xf32>
    %97 = vector.extract_strided_slice %61 {offsets = [248, 0], sizes = [31, 128], strides = [1, 1]} : vector<310x128xf32> to vector<31x128xf32>
    %cst_48 = arith.constant dense<0.000000e+00> : vector<8x128xf32>
    %98 = tpu.matmul %96, %97, %cst_48 {dimension_numbers = #tpu.dot_dimension_numbers<[1], [0], [0], [1], [0, 0, 1, 1], [], []>} : vector<8x31xf32>, vector<31x128xf32>, vector<8x128xf32> -> vector<8x128xf32>
    %99 = arith.addf %95, %98 : vector<8x128xf32>
    %100 = vector.extract_strided_slice %60 {offsets = [72, 0], sizes = [8, 31], strides = [1, 1]} : vector<80x31xf32> to vector<8x31xf32>
    %101 = vector.extract_strided_slice %61 {offsets = [279, 0], sizes = [31, 128], strides = [1, 1]} : vector<310x128xf32> to vector<31x128xf32>
    %cst_49 = arith.constant dense<0.000000e+00> : vector<8x128xf32>
    %102 = tpu.matmul %100, %101, %cst_49 {dimension_numbers = #tpu.dot_dimension_numbers<[1], [0], [0], [1], [0, 0, 1, 1], [], []>} : vector<8x31xf32>, vector<31x128xf32>, vector<8x128xf32> -> vector<8x128xf32>
    %103 = arith.addf %99, %102 : vector<8x128xf32>
    %cst_50 = arith.constant 0.000000e+00 : f32
    %104 = vector.broadcast %cst_50 : f32 to vector<8x128xf32>
    %105 = arith.maximumf %103, %104 : vector<8x128xf32>
    %c0_51 = arith.constant 0 : index
    %c0_52 = arith.constant 0 : index
    %106 = vector.load %arg16[%c0_51, %c0_52] : memref<128x20xf32, #tpu.memory_space<vmem>>, vector<128x20xf32>
    %cst_53 = arith.constant dense<0.000000e+00> : vector<8x20xf32>
    %107 = tpu.matmul %105, %106, %cst_53 {dimension_numbers = #tpu.dot_dimension_numbers<[1], [0], [0], [1], [0, 0, 1, 1], [], []>} : vector<8x128xf32>, vector<128x20xf32>, vector<8x20xf32> -> vector<8x20xf32>
    %c0_54 = arith.constant 0 : index
    %c0_55 = arith.constant 0 : index
    %108 = vector.load %arg17[%c0_54, %c0_55] : memref<1x20xf32, #tpu.memory_space<vmem>>, vector<1x20xf32>
    %109 = vector.broadcast %108 : vector<1x20xf32> to vector<8x20xf32>
    %110 = arith.addf %107, %109 : vector<8x20xf32>
    %cst_56 = arith.constant 0.000000e+00 : f32
    %111 = vector.broadcast %cst_56 : f32 to vector<8x20xf32>
    %112 = arith.maximumf %110, %111 : vector<8x20xf32>
    %c0_57 = arith.constant 0 : index
    %c0_58 = arith.constant 0 : index
    %113 = vector.load %arg18[%c0_57, %c0_58] : memref<20x1xf32, #tpu.memory_space<vmem>>, vector<20x1xf32>
    %cst_59 = arith.constant dense<0.000000e+00> : vector<8x1xf32>
    %114 = tpu.matmul %112, %113, %cst_59 {dimension_numbers = #tpu.dot_dimension_numbers<[1], [0], [0], [1], [0, 0, 1, 1], [], []>} : vector<8x20xf32>, vector<20x1xf32>, vector<8x1xf32> -> vector<8x1xf32>
    %c0_60 = arith.constant 0 : index
    %c0_61 = arith.constant 0 : index
    %115 = vector.load %arg19[%c0_60, %c0_61] : memref<1x1xf32, #tpu.memory_space<vmem>>, vector<1x1xf32>
    %116 = vector.broadcast %115 : vector<1x1xf32> to vector<8x1xf32>
    %117 = arith.addf %114, %116 : vector<8x1xf32>
    %c0_62 = arith.constant 0 : index
    %c0_63 = arith.constant 0 : index
    %118 = vector.load %arg20[%c0_62, %c0_63] : memref<8x1xf32, #tpu.memory_space<vmem>>, vector<8x1xf32>
    tpu.vector_store %arg20[%c0_62, %c0_63], %117 {strides = array<i32>} : memref<8x1xf32, #tpu.memory_space<vmem>>, vector<8x1xf32>,
    return
  }
  func.func @transform_0(%arg0: i32) -> (i32, i32) {
    %c0_i32 = arith.constant 0 : i32
    %c0_i32_0 = arith.constant 0 : i32
    return %arg0, %c0_i32 : i32, i32
  }
  func.func @transform_1(%arg0: i32) -> (i32, i32) {
    %c0_i32 = arith.constant 0 : i32
    %c0_i32_0 = arith.constant 0 : i32
    %c0_i32_1 = arith.constant 0 : i32
    return %c0_i32, %c0_i32_0 : i32, i32
  }
  func.func @transform_2(%arg0: i32) -> (i32, i32) {
    %c0_i32 = arith.constant 0 : i32
    %c0_i32_0 = arith.constant 0 : i32
    %c0_i32_1 = arith.constant 0 : i32
    return %c0_i32, %c0_i32_0 : i32, i32
  }
  func.func @transform_3(%arg0: i32) -> (i32, i32) {
    %c0_i32 = arith.constant 0 : i32
    %c0_i32_0 = arith.constant 0 : i32
    %c0_i32_1 = arith.constant 0 : i32
    return %c0_i32, %c0_i32_0 : i32, i32
  }
  func.func @transform_4(%arg0: i32) -> (i32, i32) {
    %c0_i32 = arith.constant 0 : i32
    %c0_i32_0 = arith.constant 0 : i32
    %c0_i32_1 = arith.constant 0 : i32
    return %c0_i32, %c0_i32_0 : i32, i32
  }
  func.func @transform_5(%arg0: i32) -> (i32, i32) {
    %c0_i32 = arith.constant 0 : i32
    %c0_i32_0 = arith.constant 0 : i32
    %c0_i32_1 = arith.constant 0 : i32
    return %c0_i32, %c0_i32_0 : i32, i32
  }
  func.func @transform_6(%arg0: i32) -> (i32, i32) {
    %c0_i32 = arith.constant 0 : i32
    %c0_i32_0 = arith.constant 0 : i32
    %c0_i32_1 = arith.constant 0 : i32
    return %c0_i32, %c0_i32_0 : i32, i32
  }
  func.func @transform_7(%arg0: i32) -> (i32, i32) {
    %c0_i32 = arith.constant 0 : i32
    %c0_i32_0 = arith.constant 0 : i32
    %c0_i32_1 = arith.constant 0 : i32
    return %c0_i32, %c0_i32_0 : i32, i32
  }
  func.func @transform_8(%arg0: i32) -> (i32, i32) {
    %c0_i32 = arith.constant 0 : i32
    %c0_i32_0 = arith.constant 0 : i32
    %c0_i32_1 = arith.constant 0 : i32
    return %c0_i32, %c0_i32_0 : i32, i32
  }
  func.func @transform_9(%arg0: i32) -> (i32, i32) {
    %c0_i32 = arith.constant 0 : i32
    %c0_i32_0 = arith.constant 0 : i32
    %c0_i32_1 = arith.constant 0 : i32
    return %c0_i32, %c0_i32_0 : i32, i32
  }
  func.func @transform_10(%arg0: i32) -> (i32, i32) {
    %c0_i32 = arith.constant 0 : i32
    %c0_i32_0 = arith.constant 0 : i32
    %c0_i32_1 = arith.constant 0 : i32
    return %c0_i32, %c0_i32_0 : i32, i32
  }
  func.func @transform_11(%arg0: i32) -> (i32, i32) {
    %c0_i32 = arith.constant 0 : i32
    %c0_i32_0 = arith.constant 0 : i32
    %c0_i32_1 = arith.constant 0 : i32
    return %c0_i32, %c0_i32_0 : i32, i32
  }
  func.func @transform_12(%arg0: i32) -> (i32, i32) {
    %c0_i32 = arith.constant 0 : i32
    %c0_i32_0 = arith.constant 0 : i32
    %c0_i32_1 = arith.constant 0 : i32
    return %c0_i32, %c0_i32_0 : i32, i32
  }
  func.func @transform_13(%arg0: i32) -> (i32, i32) {
    %c0_i32 = arith.constant 0 : i32
    %c0_i32_0 = arith.constant 0 : i32
    %c0_i32_1 = arith.constant 0 : i32
    return %c0_i32, %c0_i32_0 : i32, i32
  }
  func.func @transform_14(%arg0: i32) -> (i32, i32) {
    %c0_i32 = arith.constant 0 : i32
    %c0_i32_0 = arith.constant 0 : i32
    %c0_i32_1 = arith.constant 0 : i32
    return %c0_i32, %c0_i32_0 : i32, i32
  }
  func.func @transform_15(%arg0: i32) -> (i32, i32) {
    %c0_i32 = arith.constant 0 : i32
    %c0_i32_0 = arith.constant 0 : i32
    %c0_i32_1 = arith.constant 0 : i32
    return %c0_i32, %c0_i32_0 : i32, i32
  }
  func.func @transform_16(%arg0: i32) -> (i32, i32) {
    %c0_i32 = arith.constant 0 : i32
    %c0_i32_0 = arith.constant 0 : i32
    %c0_i32_1 = arith.constant 0 : i32
    return %c0_i32, %c0_i32_0 : i32, i32
  }
  func.func @transform_17(%arg0: i32) -> (i32, i32) {
    %c0_i32 = arith.constant 0 : i32
    %c0_i32_0 = arith.constant 0 : i32
    %c0_i32_1 = arith.constant 0 : i32
    return %c0_i32, %c0_i32_0 : i32, i32
  }
  func.func @transform_18(%arg0: i32) -> (i32, i32) {
    %c0_i32 = arith.constant 0 : i32
    %c0_i32_0 = arith.constant 0 : i32
    %c0_i32_1 = arith.constant 0 : i32
    return %c0_i32, %c0_i32_0 : i32, i32
  }
  func.func @transform_19(%arg0: i32) -> (i32, i32) {
    %c0_i32 = arith.constant 0 : i32
    %c0_i32_0 = arith.constant 0 : i32
    return %arg0, %c0_i32 : i32, i32
  }
}

</mosaic_0001>

<bundles_post_ra>
// kernel: tpu_custom_call.1
= control target key start
LH: loop header
LB: loop body
LE: loop exit
PB: predicated region body
PF: predicated region fallthrough
CT: control target
= control target key end

     0   :  { %v4475_v2 = vmov 0.0   ;;  %s4476_s22 = smov 127   ;;  %vm107_vm0 = vcmask 130048   ;;  %v4477_v13 = vmov 0   ;;  %vm100_vm1 = vcmask 1039360   ;;  %s5920_s0 = inlined_call_operand.vmem [shape: f32[16,256], index: 0, kind: input, shape index: {}]   ;;  %s5921_s1 = inlined_call_operand.vmem [shape: f32[80,16], index: 1, kind: input, shape index: {}]   ;;  %s5922_s3 = inlined_call_operand.vmem [shape: f32[80,1], index: 3, kind: input, shape index: {}]   ;;  %s5923_s2 = inlined_call_operand.vmem [shape: f32[80,16], index: 2, kind: input, shape index: {}]   ;;  %s5924_s4 = inlined_call_operand.vmem [shape: f32[254,127], index: 4, kind: input, shape index: {}]   ;;  %s5925_s6 = inlined_call_operand.vmem [shape: f32[160,40], index: 6, kind: input, shape index: {}]   ;;  %s5926_s7 = inlined_call_operand.vmem [shape: f32[160,1], index: 7, kind: input, shape index: {}]   ;;  %s5927_s5 = inlined_call_operand.vmem [shape: f32[160,40], index: 5, kind: input, shape index: {}]   ;;  %s5928_s8 = inlined_call_operand.vmem [shape: f32[125,63], index: 8, kind: input, shape index: {}]   ;;  %s5929_s9 = inlined_call_operand.vmem [shape: f32[160,80], index: 9, kind: input, shape index: {}]   ;;  %s5930_s10 = inlined_call_operand.vmem [shape: f32[160,80], index: 10, kind: input, shape index: {}]   ;;  %s5931_s11 = inlined_call_operand.vmem [shape: f32[160,1], index: 11, kind: input, shape index: {}]   ;;  %s5932_s12 = inlined_call_operand.vmem [shape: f32[61,31], index: 12, kind: input, shape index: {}]   ;;  %s5933_s13 = inlined_call_operand.vmem [shape: f32[310,128], index: 13, kind: input, shape index: {}]   ;;  %s5934_s15 = inlined_call_operand.vmem [shape: f32[128,20], index: 15, kind: input, shape index: {}]   ;;  %s5935_s14 = inlined_call_operand.vmem [shape: f32[1,128], index: 14, kind: input, shape index: {}]   ;;  %s5936_s17 = inlined_call_operand.vmem [shape: f32[20,1], index: 17, kind: input, shape index: {}]   ;;  %s5937_s18 = inlined_call_operand.<no memory space> [shape: f32[1,1], index: 18, kind: input, shape index: {}]   ;;  %s5938_s16 = inlined_call_operand.vmem [shape: f32[1,20], index: 16, kind: input, shape index: {}]   ;;  %s5939_s19 = inlined_call_operand.vmem [shape: f32[8,1], index: 19, kind: output, shape index: {}]  }
   0x1   :  { %5944 = sst [smem:[#allocation3_spill]] %s5920_s0  ;;  %357 = vmatprep.mubr.f32.mxu1 %v4475_v2  ;;  %202 = vmatprep.mubr.f32.mxu0 %v4475_v2  ;;  %vm611_vm2 = vcmask 1045504   ;;  %v594_v42 = vld [vmem:[%s5924_s4 + $0xf8] sm:$0x3f]  ;;  %v593_v44 = vld [vmem:[%s5924_s4 + $0xf0] sm:$0xff]  ;;  %v592_v46 = vld [vmem:[%s5924_s4 + $0xe8] sm:$0xff] }
   0x2   :  { %5945 = sst [smem:[#allocation4_spill]] %s5921_s1  ;;  %4474 = vset.pattern.permute.xlu1 %v4477_v13  ;;  %4473 = vset.pattern.permute.xlu0 %v4477_v13  ;;  %v578_v43 = vld [vmem:[%s5924_s4 + $0x78] sm:$0xff]  ;;  %v577_v45 = vld [vmem:[%s5924_s4 + $0x70] sm:$0xff]  ;;  %v576_v47 = vld [vmem:[%s5924_s4 + $0x68] sm:$0xff]  ;;  %vm595_vm3 = vcmask 1031168   ;;  %vm770_vm4 = vcmask 326656  }
   0x3   :  { %5946 = sst [smem:[#allocation5_spill]] %s5922_s3  ;;  %v591_v48 = vld [vmem:[%s5924_s4 + $0xe0] sm:$0xff]  ;;  %v590_v50 = vld [vmem:[%s5924_s4 + $0xd8] sm:$0xff]  ;;  %v589_v52 = vld [vmem:[%s5924_s4 + $0xd0] sm:$0xff]  ;;  %vm1468_vm5 = vcmask 1044480   ;;  %vm1437_vm6 = vcmask 1022976  }
   0x4   :  { %5947 = sst [smem:[#allocation6_spill]] %s5923_s2  ;;  %v575_v49 = vld [vmem:[%s5924_s4 + $0x60] sm:$0xff]  ;;  %v574_v51 = vld [vmem:[%s5924_s4 + $0x58] sm:$0xff]  ;;  %v573_v53 = vld [vmem:[%s5924_s4 + $0x50] sm:$0xff]  ;;  %vm1677_vm7 = vcmask 654336   ;;  %vm2539_vm8 = vcmask 1046528  }
   0x5   :  { %s5948_s20 = sld [smem:[#allocation3_spill]]  ;;  %v588_v54 = vld [vmem:[%s5924_s4 + $0xc8] sm:$0xff]  ;;  %v587_v56 = vld [vmem:[%s5924_s4 + $0xc0] sm:$0xff]  ;;  %v586_v58 = vld [vmem:[%s5924_s4 + $0xb8] sm:$0xff]  ;;  %vm2810_vm9 = vcmask 1042432   ;;  %vm2336_vm10 = vcmask 498688  }
   0x6   :  { %s5949_s27 = sld [smem:[#allocation4_spill]]  ;;  %v572_v55 = vld [vmem:[%s5924_s4 + $0x48] sm:$0xff]  ;;  %v571_v57 = vld [vmem:[%s5924_s4 + $0x40] sm:$0xff]  ;;  %v570_v59 = vld [vmem:[%s5924_s4 + $0x38] sm:$0xff]  ;;  %vm4478_vm11 = vmmov 0   ;;  %vm2624_vm12 = vcmask 1040384  }
   0x7   :  { %s5950_s30 = sld [smem:[#allocation5_spill]]  ;;  %v585_v60 = vld [vmem:[%s5924_s4 + $0xb0] sm:$0xff]  ;;  %v584_v62 = vld [vmem:[%s5924_s4 + $0xa8] sm:$0xff]  ;;  %vm2535_vm13 = vcmask 252928   ;;  %vm2717_vm14 = vcmask 1041408   ;;  %vm2903_vm15 = vcmask 1043456  }
   0x8   :  { %s5951_s0 = sld [smem:[#allocation6_spill]]  ;;  %v569_v61 = vld [vmem:[%s5924_s4 + $0x30] sm:$0xff]  ;;  %v568_v63 = vld [vmem:[%s5924_s4 + $0x28] sm:$0xff] }
   0xb   :  { %v66_v0 = vld [vmem:[%s5948_s20 + $0x10] sm:$0xff]  ;;  %v64_v1 = vld [vmem:[%s5948_s20] sm:$0xff]  ;;  %v67_v3 = vld [vmem:[%s5948_s20 + $0x18] sm:$0xff] }
   0xc   :  { %96 = vrot.lane.b32.xlu0 %v66_v0, %s4476_s22  ;;  %92 = vrot.lane.b32.xlu1 %v64_v1, %s4476_s22  ;;  %v65_v4 = vld [vmem:[%s5948_s20 + $0x8] sm:$0xff]  ;;  %v68_v5 = vld [vmem:[%s5949_s27] sm:$0xff] }
   0xd   :  { %321 = vmatprep.subr.mxu1 %v67_v3  ;;  %v69_v6 = vld [vmem:[%s5949_s27 + $0x8] sm:$0xff]  ;;  %v70_v7 = vld [vmem:[%s5949_s27 + $0x10] sm:$0xff]  ;;  %v71_v8 = vld [vmem:[%s5949_s27 + $0x18] sm:$0xff] }
   0xe   :  { %322 = vmatpush1.msra.mxu1 %v66_v0  ;;  %v72_v9 = vld [vmem:[%s5949_s27 + $0x20] sm:$0xff]  ;;  %v73_v10 = vld [vmem:[%s5949_s27 + $0x28] sm:$0xff]  ;;  %v74_v11 = vld [vmem:[%s5949_s27 + $0x30] sm:$0xff] }
   0xf   :  { %323 = vmatprep.subr.mxu1 %v65_v4  ;;  %v75_v12 = vld [vmem:[%s5949_s27 + $0x38] sm:$0xff]  ;;  %v418_v14 = vld [vmem:[%s5950_s30] sm:$0xff]  ;;  %v423_v15 = vld [vmem:[%s5950_s30 + $0x28] sm:$0xff] }
  0x10   :  { %98 = vrot.lane.b32.xlu0 %v67_v3, %s4476_s22  ;;  %94 = vrot.lane.b32.xlu1 %v65_v4, %s4476_s22  ;;  %v419_v16 = vld [vmem:[%s5950_s30 + $0x8] sm:$0xff]  ;;  %v424_v17 = vld [vmem:[%s5950_s30 + $0x30] sm:$0xff] }
  0x11   :  { %324 = vmatpush1.msra.mxu1 %v64_v1  ;;  %v76_v18 = vld [vmem:[%s5949_s27 + $0x40] sm:$0xff]  ;;  %v420_v19 = vld [vmem:[%s5950_s30 + $0x10] sm:$0xff]  ;;  %v425_v20 = vld [vmem:[%s5950_s30 + $0x38] sm:$0xff] }
  0x12   :  { %3632 = vmatmul.mubr.msk.f32.vlgmr.msra.gmra.mxu1 %vm107_vm0, %v68_v5  ;;  %v77_v21 = vld [vmem:[%s5949_s27 + $0x48] sm:$0xff]  ;;  %v421_v22 = vld [vmem:[%s5950_s30 + $0x18] sm:$0xff]  ;;  %v426_v23 = vld [vmem:[%s5950_s30 + $0x40] sm:$0xff] }
  0x13   :  { %363 = vmatprep.mubr.f32.mxu1 %v4475_v2  ;;  %v422_v24 = vld [vmem:[%s5950_s30 + $0x20] sm:$0xff]  ;;  %v427_v25 = vld [vmem:[%s5950_s30 + $0x48] sm:$0xff]  ;;  %v80_v34 = vld [vmem:[%s5951_s0 + $0x10] sm:$0xff] }
  0x14   :  { %430 = vperm.xlu0 %4473, %v418_v14   ;;  %455 = vperm.xlu1 %4474, %v423_v15   ;;  %v78_v31 = vld [vmem:[%s5951_s0] sm:$0xff]  ;;  %v79_v33 = vld [vmem:[%s5951_s0 + $0x8] sm:$0xff]  ;;  %v81_v35 = vld [vmem:[%s5951_s0 + $0x18] sm:$0xff] }
  0x15   :  { %v82_v36 = vld [vmem:[%s5951_s0 + $0x20] sm:$0xff]  ;;  %v83_v37 = vld [vmem:[%s5951_s0 + $0x28] sm:$0xff]  ;;  %v84_v38 = vld [vmem:[%s5951_s0 + $0x30] sm:$0xff] }
  0x16   :  { %3633 = vmatmul.mubr.msk.f32.gmra.mxu1 %vm107_vm0, %v69_v6  ;;  %v85_v39 = vld [vmem:[%s5951_s0 + $0x38] sm:$0xff]  ;;  %v86_v40 = vld [vmem:[%s5951_s0 + $0x40] sm:$0xff]  ;;  %v87_v41 = vld [vmem:[%s5951_s0 + $0x48] sm:$0xff] }
  0x17   :  { %369 = vmatprep.mubr.f32.mxu1 %v4475_v2  ;;  %v583_v0 = vld [vmem:[%s5924_s4 + $0xa0] sm:$0xff]  ;;  %v582_v3 = vld [vmem:[%s5924_s4 + $0x98] sm:$0xff]  ;;  %v581_v5 = vld [vmem:[%s5924_s4 + $0x90] sm:$0xff] }
  0x18   :  { %435 = vperm.xlu1 %4474, %v419_v16   ;;  %460 = vperm.xlu0 %4473, %v424_v17   ;;  %v567_v1 = vld [vmem:[%s5924_s4 + $0x20] sm:$0xff]  ;;  %v566_v4 = vld [vmem:[%s5924_s4 + $0x18] sm:$0xff] }
  0x1a   :  { %3634 = vmatmul.mubr.msk.f32.gmra.mxu1 %vm107_vm0, %v70_v7 }
  0x1b   :  { %375 = vmatprep.mubr.f32.mxu1 %v4475_v2 }
  0x1c   :  { %440 = vperm.xlu1 %4474, %v420_v19   ;;  %465 = vperm.xlu0 %4473, %v425_v20  }
  0x1e   :  { %3635 = vmatmul.mubr.msk.f32.gmra.mxu1 %vm107_vm0, %v71_v8 }
  0x1f   :  { %381 = vmatprep.mubr.f32.mxu1 %v4475_v2 }
  0x20   :  { %445 = vperm.xlu1 %4474, %v421_v22   ;;  %470 = vperm.xlu0 %4473, %v426_v23  }
  0x22   :  { %3636 = vmatmul.mubr.msk.f32.gmra.mxu1 %vm107_vm0, %v72_v9 }
  0x23   :  { %387 = vmatprep.mubr.f32.mxu1 %v4475_v2 }
  0x24   :  { %450 = vperm.xlu1 %4474, %v422_v24   ;;  %475 = vperm.xlu0 %4473, %v427_v25  }
  0x26   :  { %3637 = vmatmul.mubr.msk.f32.gmra.mxu1 %vm107_vm0, %v73_v10 }
  0x27   :  { %393 = vmatprep.mubr.f32.mxu1 %v4475_v2 }
  0x2a   :  { %3638 = vmatmul.mubr.msk.f32.gmra.mxu1 %vm107_vm0, %v74_v11 }
  0x2b   :  { %399 = vmatprep.mubr.f32.mxu1 %v4475_v2 }
  0x2e   :  { %3639 = vmatmul.mubr.msk.f32.gmra.mxu1 %vm107_vm0, %v75_v12 }
  0x2f   :  { %405 = vmatprep.mubr.f32.mxu1 %v4475_v2 }
  0x32   :  { %3640 = vmatmul.mubr.msk.f32.gmra.mxu1 %vm107_vm0, %v76_v18 }
  0x33   :  { %411 = vmatprep.mubr.f32.mxu1 %v4475_v2 }
  0x36   :  { %3641 = vmatmul.mubr.msk.f32.gmra.mxu1 %vm107_vm0, %v77_v21 }
  0x7e   :  { %v97_v26 = vpop.permute.xlu0 %96  ;;  %v93_v27 = vpop.permute.xlu1 %92 }
  0x82   :  { %v99_v28 = vpop.permute.xlu0 %98  ;;  %v95_v29 = vpop.permute.xlu1 %94 }
  0x83   :  { %166 = vmatprep.subr.mxu0 %v99_v28  ;;  %v102_v30 = vsel %vm100_vm1, %v97_v26, %v99_v28  ;;  %v101_v32 = vsel %vm100_vm1, %v93_v27, %v95_v29  ;;  %v565_v27 = vld [vmem:[%s5924_s4 + $0x10] sm:$0xff]  ;;  %v580_v28 = vld [vmem:[%s5924_s4 + $0x88] sm:$0xff] }
  0x84   :  { %167 = vmatpush1.msra.mxu0 %v102_v30 }
  0x85   :  { %168 = vmatprep.subr.mxu0 %v95_v29 }
  0x86   :  { %169 = vmatpush1.msra.mxu0 %v101_v32  ;;  %v564_v32 = vld [vmem:[%s5924_s4 + $0x8] sm:$0xff] }
  0x87   :  { %3622 = vmatmul.mubr.msk.f32.vlgmr.msra.gmra.mxu0 %vm107_vm0, %v78_v31  ;;  %3775 = vmatprep.subr.msk.mxu0 %vm611_vm2, %v594_v42 }
  0x88   :  { %208 = vmatprep.mubr.f32.mxu0 %v4475_v2  ;;  %3776 = vmatpush3.msra.mxu0 %v578_v43 }
  0x89   :  { %3777 = vmatprep.subr.mxu0 %v593_v44 }
  0x8a   :  { %3778 = vmatpush3.msra.mxu0 %v577_v45 }
  0x8b   :  { %3623 = vmatmul.mubr.msk.f32.gmra.mxu0 %vm107_vm0, %v79_v33  ;;  %3779 = vmatprep.subr.mxu0 %v592_v46 }
  0x8c   :  { %214 = vmatprep.mubr.f32.mxu0 %v4475_v2  ;;  %3780 = vmatpush3.msra.mxu0 %v576_v47 }
  0x8d   :  { %3781 = vmatprep.subr.mxu0 %v591_v48 }
  0x8e   :  { %3782 = vmatpush3.msra.mxu0 %v575_v49 }
  0x8f   :  { %3624 = vmatmul.mubr.msk.f32.gmra.mxu0 %vm107_vm0, %v80_v34  ;;  %3783 = vmatprep.subr.mxu0 %v590_v50  ;;  %v456_v25 = vpop.permute.xlu1 %455  ;;  %v431_v31 = vpop.permute.xlu0 %430  ;;  %v579_v34 = vld [vmem:[%s5924_s4 + $0x80] sm:$0xff] }
  0x90   :  { %220 = vmatprep.mubr.f32.mxu0 %v4475_v2  ;;  %3784 = vmatpush3.msra.mxu0 %v574_v51 }
  0x91   :  { %3785 = vmatprep.subr.mxu0 %v589_v52 }
  0x92   :  { %3786 = vmatpush3.msra.mxu0 %v573_v53 }
  0x93   :  { %3625 = vmatmul.mubr.msk.f32.gmra.mxu0 %vm107_vm0, %v81_v35  ;;  %3787 = vmatprep.subr.mxu0 %v588_v54  ;;  %v436_v35 = vpop.permute.xlu1 %435 }
  0x94   :  { %226 = vmatprep.mubr.f32.mxu0 %v4475_v2  ;;  %3788 = vmatpush3.msra.mxu0 %v572_v55 }
  0x95   :  { %3789 = vmatprep.subr.mxu0 %v587_v56 }
  0x96   :  { %3790 = vmatpush3.msra.mxu0 %v571_v57 }
  0x97   :  { %3626 = vmatmul.mubr.msk.f32.gmra.mxu0 %vm107_vm0, %v82_v36  ;;  %3791 = vmatprep.subr.mxu0 %v586_v58  ;;  %v563_v36 = vld [vmem:[%s5924_s4] sm:$0xff]  ;;  %v441_v48 = vpop.permute.xlu1 %440 }
  0x98   :  { %232 = vmatprep.mubr.f32.mxu0 %v4475_v2  ;;  %3792 = vmatpush3.msra.mxu0 %v570_v59 }
  0x99   :  { %3793 = vmatprep.subr.mxu0 %v585_v60 }
  0x9a   :  { %3794 = vmatpush3.msra.mxu0 %v569_v61 }
  0x9b   :  { %3627 = vmatmul.mubr.msk.f32.gmra.mxu0 %vm107_vm0, %v83_v37  ;;  %3795 = vmatprep.subr.mxu0 %v584_v62 }
  0x9c   :  { %238 = vmatprep.mubr.f32.mxu0 %v4475_v2  ;;  %3796 = vmatpush3.msra.mxu0 %v568_v63 }
  0x9d   :  { %3797 = vmatprep.subr.mxu0 %v583_v0 }
  0x9e   :  { %3798 = vmatpush3.msra.mxu0 %v567_v1 }
  0x9f   :  { %3628 = vmatmul.mubr.msk.f32.gmra.mxu0 %vm107_vm0, %v84_v38  ;;  %3799 = vmatprep.subr.mxu0 %v582_v3 }
  0xa0   :  { %244 = vmatprep.mubr.f32.mxu0 %v4475_v2  ;;  %3800 = vmatpush3.msra.mxu0 %v566_v4 }
  0xa1   :  { %3801 = vmatprep.subr.mxu0 %v581_v5  ;;  %v446_v5 = vpop.permute.xlu1 %445 }
  0xa2   :  { %3802 = vmatpush3.msra.mxu0 %v565_v27 }
  0xa3   :  { %3629 = vmatmul.mubr.msk.f32.gmra.mxu0 %vm107_vm0, %v85_v39  ;;  %3803 = vmatprep.subr.mxu0 %v580_v28 }
  0xa4   :  { %250 = vmatprep.mubr.f32.mxu0 %v4475_v2  ;;  %3804 = vmatpush3.msra.mxu0 %v564_v32 }
  0xa5   :  { %3805 = vmatprep.subr.mxu0 %v579_v34 }
  0xa6   :  { %3806 = vmatpush3.msra.mxu0 %v563_v36 }
  0xa7   :  { %3630 = vmatmul.mubr.msk.f32.gmra.mxu0 %vm107_vm0, %v86_v40  ;;  %v461_v40 = vpop.permute.xlu0 %460 }
  0xa8   :  { %256 = vmatprep.mubr.f32.mxu0 %v4475_v2 }
  0xab   :  { %3631 = vmatmul.mubr.msk.f32.gmra.mxu0 %vm107_vm0, %v87_v41  ;;  %v466_v54 = vpop.permute.xlu0 %465  ;;  %vm3539_vm0 = vcmask 162816  }
  0xd2   :  { %v359_v6 = vpop.f32.mrf.mxu1 }
  0xd4   :  { %v361_v7 = vpop.f32.mrf.mxu1 }
  0xd6   :  { %v365_v8 = vpop.f32.mrf.mxu1 }
  0xd8   :  { %v367_v9 = vpop.f32.mrf.mxu1 }
  0xda   :  { %v371_v10 = vpop.f32.mrf.mxu1 }
  0xdc   :  { %v373_v11 = vpop.f32.mrf.mxu1 }
  0xde   :  { %v4809_v12 = vpop.f32.mrf.mxu1 }
  0xe0   :  { %v4811_v13 = vpop.f32.mrf.mxu1 }
  0xe2   :  { %v4813_v14 = vpop.f32.mrf.mxu1 }
  0xe4   :  { %v4815_v15 = vpop.f32.mrf.mxu1 }
  0xe6   :  { %v389_v18 = vpop.f32.mrf.mxu1 }
  0xe8   :  { %v391_v21 = vpop.f32.mrf.mxu1 }
  0xea   :  { %v395_v24 = vpop.f32.mrf.mxu1 }
  0xec   :  { %v397_v30 = vpop.f32.mrf.mxu1 }
  0xee   :  { %v401_v38 = vpop.f32.mrf.mxu1 }
  0xf0   :  { %v403_v46 = vpop.f32.mrf.mxu1 }
  0xf2   :  { %v407_v60 = vpop.f32.mrf.mxu1 }
 0x147   :  { %v204_v16 = vpop.f32.mrf.mxu0 }
 0x148   :  { %v360_v39 = vadd.f32 %v359_v6, %v204_v16  ;;  %v409_v16 = vpop.f32.mrf.mxu1 }
 0x149   :  { %v206_v17 = vpop.f32.mrf.mxu0 }
 0x14a   :  { %v362_v42 = vadd.f32 %v361_v7, %v206_v17  ;;  %v478_v47 = vadd.f32 %v431_v31, %v360_v39  ;;  %v413_v28 = vpop.f32.mrf.mxu1 }
 0x14b   :  { %v210_v19 = vpop.f32.mrf.mxu0 }
 0x14c   :  { %v366_v44 = vadd.f32 %v365_v8, %v210_v19  ;;  %v479_v53 = vadd.f32 %v431_v31, %v362_v42  ;;  %v415_v42 = vpop.f32.mrf.mxu1 }
 0x14d   :  { %v212_v20 = vpop.f32.mrf.mxu0 }
 0x14e   :  { %v368_v51 = vadd.f32 %v367_v9, %v212_v20  ;;  %v480_v58 = vadd.f32 %v436_v35, %v366_v44 }
 0x14f   :  { %v216_v22 = vpop.f32.mrf.mxu0 }
 0x150   :  { %v372_v61 = vadd.f32 %v371_v10, %v216_v22  ;;  %v481_v1 = vadd.f32 %v436_v35, %v368_v51 }
 0x151   :  { %v218_v23 = vpop.f32.mrf.mxu0 }
 0x152   :  { %v374_v4 = vadd.f32 %v373_v11, %v218_v23  ;;  %v482_v17 = vadd.f32 %v441_v48, %v372_v61 }
 0x153   :  { %v222_v26 = vpop.f32.mrf.mxu0 }
 0x154   :  { %v378_v9 = vadd.f32 %v4809_v12, %v222_v26  ;;  %v483_v23 = vadd.f32 %v441_v48, %v374_v4 }
 0x155   :  { %v224_v29 = vpop.f32.mrf.mxu0 }
 0x156   :  { %v484_v12 = vadd.f32 %v446_v5, %v378_v9 }
 0x157   :  { %v4826_v33 = vpop.f32.mrf.mxu0 }
 0x159   :  { %v4834_v37 = vpop.f32.mrf.mxu0 }
 0x15a   :  { %v386_v36 = vadd.f32 %v4815_v15, %v4834_v37 }
 0x15b   :  { %v234_v41 = vpop.f32.mrf.mxu0 }
 0x15c   :  { %v390_v43 = vadd.f32 %v389_v18, %v234_v41  ;;  %v471_v18 = vpop.permute.xlu0 %470 }
 0x15d   :  { %v236_v45 = vpop.f32.mrf.mxu0 }
 0x15e   :  { %v488_v49 = vadd.f32 %v456_v25, %v390_v43  ;;  %v392_v50 = vadd.f32 %v391_v21, %v236_v45  ;;  %v380_v21 = vadd.f32 %v4811_v13, %v224_v29  ;;  %v451_v13 = vpop.permute.xlu1 %450 }
 0x15f   :  { %v240_v52 = vpop.f32.mrf.mxu0 }
 0x160   :  { %v489_v55 = vadd.f32 %v456_v25, %v392_v50  ;;  %v396_v56 = vadd.f32 %v395_v24, %v240_v52  ;;  %v4836_v57 = vmax.f32 %v478_v47, %v488_v49  ;;  %v485_v35 = vadd.f32 %v446_v5, %v380_v21 }
 0x161   :  { %v242_v59 = vpop.f32.mrf.mxu0 }
 0x162   :  { %v490_v62 = vadd.f32 %v461_v40, %v396_v56  ;;  %v398_v63 = vadd.f32 %v397_v30, %v242_v59  ;;  %518 = vrot.lane.b32.xlu1 %v4836_v57, %s4476_s22  ;;  %v4840_v0 = vmax.f32 %v479_v53, %v489_v55  ;;  %v384_v30 = vadd.f32 %v4813_v14, %v4826_v33 }
 0x163   :  { %v246_v3 = vpop.f32.mrf.mxu0 }
 0x164   :  { %v491_v6 = vadd.f32 %v461_v40, %v398_v63  ;;  %v402_v7 = vadd.f32 %v401_v38, %v246_v3  ;;  %520 = vrot.lane.b32.xlu0 %v4840_v0, %s4476_s22  ;;  %v4844_v8 = vmax.f32 %v480_v58, %v490_v62  ;;  %v476_v38 = vpop.permute.xlu0 %475  ;;  %v486_v14 = vadd.f32 %v451_v13, %v384_v30 }
 0x165   :  { %v248_v10 = vpop.f32.mrf.mxu0 }
 0x166   :  { %v492_v19 = vadd.f32 %v466_v54, %v402_v7  ;;  %v404_v20 = vadd.f32 %v403_v46, %v248_v10  ;;  %522 = vrot.lane.b32.xlu1 %v4844_v8, %s4476_s22  ;;  %v501_v11 = vmax.f32 %v481_v1, %v491_v6  ;;  %v487_v46 = vadd.f32 %v451_v13, %v386_v36  ;;  %v1222_v13 = vld [vmem:[%s5926_s7 + $0x8] sm:$0xff]  ;;  %v1223_v36 = vld [vmem:[%s5926_s7 + $0x10] sm:$0xff] }
 0x167   :  { %v252_v22 = vpop.f32.mrf.mxu0 }
 0x168   :  { %v493_v24 = vadd.f32 %v466_v54, %v404_v20  ;;  %v408_v25 = vadd.f32 %v407_v60, %v252_v22  ;;  %524 = vrot.lane.b32.xlu0 %v501_v11, %s4476_s22  ;;  %v502_v27 = vmax.f32 %v482_v17, %v492_v19 }
 0x169   :  { %v254_v26 = vpop.f32.mrf.mxu0 }
 0x16a   :  { %v494_v31 = vadd.f32 %v471_v18, %v408_v25  ;;  %v410_v32 = vadd.f32 %v409_v16, %v254_v26  ;;  %526 = vrot.lane.b32.xlu1 %v502_v27, %s4476_s22  ;;  %v503_v34 = vmax.f32 %v483_v23, %v493_v24 }
 0x16b   :  { %v258_v29 = vpop.f32.mrf.mxu0 }
 0x16c   :  { %v495_v39 = vadd.f32 %v471_v18, %v410_v32  ;;  %v414_v40 = vadd.f32 %v413_v28, %v258_v29  ;;  %528 = vrot.lane.b32.xlu0 %v503_v34, %s4476_s22  ;;  %v504_v41 = vmax.f32 %v484_v12, %v494_v31  ;;  %v730_v12 = vld [vmem:[%s5925_s6] sm:$0xff] }
 0x16d   :  { %v260_v43 = vpop.f32.mrf.mxu0  ;;  %v1221_v32 = vld [vmem:[%s5926_s7] sm:$0xff] }
 0x16e   :  { %v496_v33 = vadd.f32 %v476_v38, %v414_v40  ;;  %v416_v44 = vadd.f32 %v415_v42, %v260_v43  ;;  %530 = vrot.lane.b32.xlu1 %v504_v41, %s4476_s22  ;;  %v505_v45 = vmax.f32 %v485_v35, %v495_v39  ;;  %v734_v39 = vld [vmem:[%s5925_s6 + $0x20] sm:$0xff]  ;;  %v1224_v40 = vld [vmem:[%s5926_s7 + $0x18] sm:$0xff] }
 0x16f   :  { %4063 = vmatprep.mubr.msk.f32.mxu1 %vm770_vm4, %v734_v39  ;;  %v1225_v42 = vld [vmem:[%s5926_s7 + $0x20] sm:$0xff] }
 0x170   :  { %v497_v47 = vadd.f32 %v476_v38, %v416_v44  ;;  %532 = vrot.lane.b32.xlu0 %v505_v45, %s4476_s22  ;;  %v506_v48 = vmax.f32 %v486_v14, %v496_v33  ;;  %v1231_v38 = vld [vmem:[%s5926_s7 + $0x50] sm:$0xff]  ;;  %v1233_v43 = vld [vmem:[%s5926_s7 + $0x60] sm:$0xff]  ;;  %v1226_v14 = vld [vmem:[%s5926_s7 + $0x28] sm:$0xff] }
 0x171   :  { %v1234_v33 = vld [vmem:[%s5926_s7 + $0x68] sm:$0xff]  ;;  %v1227_v44 = vld [vmem:[%s5926_s7 + $0x30] sm:$0xff]  ;;  %v1433_v39 = vld [vmem:[%s5928_s8 + $0x60] sm:$0xff] }
 0x172   :  { %534 = vrot.lane.b32.xlu1 %v506_v48, %s4476_s22  ;;  %v507_v15 = vmax.f32 %v487_v46, %v497_v47  ;;  %v1228_v46 = vld [vmem:[%s5926_s7 + $0x38] sm:$0xff] }
 0x173   :  { %v1236_v47 = vld [vmem:[%s5926_s7 + $0x78] sm:$0xff] }
 0x174   :  { %536 = vrot.lane.b32.xlu0 %v507_v15, %s4476_s22 }
 0x1d4   :  { %v519_v37 = vpop.permute.xlu1 %518 }
 0x1d6   :  { %v521_v49 = vpop.permute.xlu0 %520 }
 0x1d7   :  { %v538_v50 = vsel %vm100_vm1, %v519_v37, %v521_v49  ;;  %v554_v51 = vmax.f32 %v4840_v0, %v521_v49  ;;  %v1230_v37 = vld [vmem:[%s5926_s7 + $0x48] sm:$0xff] }
 0x1d8   :  { %v553_v52 = vmax.f32 %v4836_v57, %v538_v50  ;;  %v523_v53 = vpop.permute.xlu1 %522  ;;  %v1238_v49 = vld [vmem:[%s5926_s7 + $0x88] sm:$0xff]  ;;  %v1239_v50 = vld [vmem:[%s5926_s7 + $0x90] sm:$0xff] }
 0x1d9   :  { %3643 = vmatprep.mubr.msk.f32.mxu0 %vm595_vm3, %v554_v51  ;;  %v1240_v51 = vld [vmem:[%s5926_s7 + $0x98] sm:$0xff] }
 0x1da   :  { %v525_v54 = vpop.permute.xlu0 %524  ;;  %680 = vmatmul.mubr.f32.vlgmr.msra.gmra.mxu0 %v553_v52 }
 0x1db   :  { %v539_v55 = vsel %vm100_vm1, %v523_v53, %v525_v54  ;;  %v556_v56 = vmax.f32 %v501_v11, %v525_v54 }
 0x1dc   :  { %v555_v58 = vmax.f32 %v4844_v8, %v539_v55  ;;  %v527_v59 = vpop.permute.xlu1 %526 }
 0x1dd   :  { %3644 = vmatprep.mubr.msk.f32.mxu0 %vm595_vm3, %v556_v56 }
 0x1de   :  { %v529_v60 = vpop.permute.xlu0 %528  ;;  %685 = vmatmul.mubr.f32.gmra.mxu0 %v555_v58  ;;  %v731_v58 = vld [vmem:[%s5925_s6 + $0x8] sm:$0xff] }
 0x1df   :  { %v540_v61 = vsel %vm100_vm1, %v527_v59, %v529_v60  ;;  %v558_v62 = vmax.f32 %v503_v34, %v529_v60  ;;  %v732_v59 = vld [vmem:[%s5925_s6 + $0x10] sm:$0xff]  ;;  %v735_v60 = vld [vmem:[%s5925_s6 + $0x28] sm:$0xff] }
 0x1e0   :  { %v557_v63 = vmax.f32 %v502_v27, %v540_v61  ;;  %v531_v57 = vpop.permute.xlu1 %530  ;;  %v736_v61 = vld [vmem:[%s5925_s6 + $0x30] sm:$0xff] }
 0x1e1   :  { %3645 = vmatprep.mubr.msk.f32.mxu0 %vm595_vm3, %v558_v62  ;;  %v733_v62 = vld [vmem:[%s5925_s6 + $0x18] sm:$0xff] }
 0x1e2   :  { %v533_v0 = vpop.permute.xlu0 %532  ;;  %690 = vmatmul.mubr.f32.gmra.mxu0 %v557_v63  ;;  %v710_v63 = vld [vmem:[%s5927_s5] sm:$0xff] }
 0x1e3   :  { %v541_v1 = vsel %vm100_vm1, %v531_v57, %v533_v0  ;;  %v560_v3 = vmax.f32 %v505_v45, %v533_v0  ;;  %v1235_v45 = vld [vmem:[%s5926_s7 + $0x70] sm:$0xff]  ;;  %v737_v57 = vld [vmem:[%s5925_s6 + $0x38] sm:$0xff]  ;;  %v738_v0 = vld [vmem:[%s5925_s6 + $0x40] sm:$0xff] }
 0x1e4   :  { %v559_v4 = vmax.f32 %v504_v41, %v541_v1  ;;  %v535_v5 = vpop.permute.xlu1 %534  ;;  %v1232_v41 = vld [vmem:[%s5926_s7 + $0x58] sm:$0xff]  ;;  %v711_v1 = vld [vmem:[%s5927_s5 + $0x8] sm:$0xff] }
 0x1e5   :  { %3646 = vmatprep.mubr.msk.f32.mxu0 %vm595_vm3, %v560_v3  ;;  %v739_v3 = vld [vmem:[%s5925_s6 + $0x48] sm:$0xff] }
 0x1e6   :  { %v537_v6 = vpop.permute.xlu0 %536  ;;  %695 = vmatmul.mubr.f32.gmra.mxu0 %v559_v4  ;;  %v712_v4 = vld [vmem:[%s5927_s5 + $0x10] sm:$0xff] }
 0x1e7   :  { %v542_v7 = vsel %vm100_vm1, %v535_v5, %v537_v6  ;;  %v562_v8 = vmax.f32 %v507_v15, %v537_v6  ;;  %v1237_v15 = vld [vmem:[%s5926_s7 + $0x80] sm:$0xff]  ;;  %v740_v5 = vld [vmem:[%s5925_s6 + $0x50] sm:$0xff]  ;;  %v713_v6 = vld [vmem:[%s5927_s5 + $0x18] sm:$0xff]  ;;  %vm3616_vm1 = vcmask 7168  }
 0x1e8   :  { %v561_v9 = vmax.f32 %v506_v48, %v542_v7  ;;  %v1229_v48 = vld [vmem:[%s5926_s7 + $0x40] sm:$0xff]  ;;  %v741_v7 = vld [vmem:[%s5925_s6 + $0x58] sm:$0xff] }
 0x1e9   :  { %3647 = vmatprep.mubr.msk.f32.mxu0 %vm595_vm3, %v562_v8  ;;  %v714_v8 = vld [vmem:[%s5927_s5 + $0x20] sm:$0xff] }
 0x1ea   :  { %700 = vmatmul.mubr.f32.gmra.mxu0 %v561_v9  ;;  %v742_v9 = vld [vmem:[%s5925_s6 + $0x60] sm:$0xff] }
 0x1eb   :  { %4057 = vmatprep.mubr.msk.f32.mxu0 %vm770_vm4, %v730_v12  ;;  %v749_v12 = vld [vmem:[%s5925_s6 + $0x98] sm:$0xff] }
 0x29a   :  { %v3807_v10 = vpop.f32.mrf.mxu0 }
 0x29c   :  { %v3808_v16 = vpop.f32.mrf.mxu0 }
 0x29d   :  { %v3809_v34 = vadd.f32 %v3808_v16, %v3807_v10  ;;  %v715_v10 = vld [vmem:[%s5927_s5 + $0x28] sm:$0xff] }
 0x29e   :  { %v3810_v17 = vpop.f32.mrf.mxu0  ;;  %v743_v16 = vld [vmem:[%s5925_s6 + $0x68] sm:$0xff] }
 0x29f   :  { %v4900_v29 = vmax.f32 %v3809_v34, 0.0  ;;  %v727_v34 = vld [vmem:[%s5927_s5 + $0x88] sm:$0xff] }
 0x2a0   :  { %v3811_v18 = vpop.f32.mrf.mxu0 }
 0x2a1   :  { %v3812_v24 = vadd.f32 %v3811_v18, %v3810_v17  ;;  %v716_v17 = vld [vmem:[%s5927_s5 + $0x30] sm:$0xff] }
 0x2a2   :  { %v3813_v19 = vpop.f32.mrf.mxu0  ;;  %v744_v18 = vld [vmem:[%s5925_s6 + $0x70] sm:$0xff] }
 0x2a3   :  { %v4882_v28 = vmax.f32 %v3812_v24, 0.0  ;;  %v720_v24 = vld [vmem:[%s5927_s5 + $0x50] sm:$0xff] }
 0x2a4   :  { %v3814_v20 = vpop.f32.mrf.mxu0 }
 0x2a5   :  { %v3815_v30 = vadd.f32 %v3814_v20, %v3813_v19  ;;  %v717_v19 = vld [vmem:[%s5927_s5 + $0x38] sm:$0xff] }
 0x2a6   :  { %v3816_v11 = vpop.f32.mrf.mxu0  ;;  %v745_v20 = vld [vmem:[%s5925_s6 + $0x78] sm:$0xff] }
 0x2a7   :  { %v4893_v35 = vmax.f32 %v3815_v30, 0.0  ;;  %v724_v30 = vld [vmem:[%s5927_s5 + $0x70] sm:$0xff] }
 0x2a8   :  { %v3817_v21 = vpop.f32.mrf.mxu0 }
 0x2a9   :  { %v3818_v22 = vadd.f32 %v3817_v21, %v3816_v11  ;;  %v718_v11 = vld [vmem:[%s5927_s5 + $0x40] sm:$0xff] }
 0x2aa   :  { %v3819_v23 = vpop.f32.mrf.mxu0  ;;  %v746_v21 = vld [vmem:[%s5925_s6 + $0x80] sm:$0xff] }
 0x2ab   :  { %v4874_v25 = vmax.f32 %v3818_v22, 0.0  ;;  %v719_v22 = vld [vmem:[%s5927_s5 + $0x48] sm:$0xff] }
 0x2ac   :  { %v3820_v27 = vpop.f32.mrf.mxu0 }
 0x2ad   :  { %v3821_v26 = vadd.f32 %v3820_v27, %v3819_v23  ;;  %761 = vrot.lane.b32.xlu0 %v4874_v25, %s4476_s22  ;;  %v747_v23 = vld [vmem:[%s5925_s6 + $0x88] sm:$0xff]  ;;  %v721_v27 = vld [vmem:[%s5927_s5 + $0x58] sm:$0xff] }
 0x2af   :  { %v4884_v31 = vmax.f32 %v3821_v26, 0.0  ;;  %v722_v26 = vld [vmem:[%s5927_s5 + $0x60] sm:$0xff] }
 0x2b1   :  { %757 = vrot.lane.b32.xlu0 %v4882_v28, %s4476_s22  ;;  %763 = vrot.lane.b32.xlu1 %v4884_v31, %s4476_s22 }
 0x2b5   :  { %1243 = vperm.xlu0 %4473, %v1221_v32   ;;  %759 = vrot.lane.b32.xlu1 %v4893_v35, %s4476_s22  ;;  %v726_v32 = vld [vmem:[%s5927_s5 + $0x80] sm:$0xff] }
 0x2b9   :  { %1248 = vperm.xlu0 %4473, %v1222_v13   ;;  %755 = vrot.lane.b32.xlu1 %v4900_v29, %s4476_s22  ;;  %v729_v13 = vld [vmem:[%s5927_s5 + $0x98] sm:$0xff] }
 0x2bd   :  { %1253 = vperm.xlu0 %4473, %v1223_v36   ;;  %1293 = vperm.xlu1 %4474, %v1231_v38   ;;  %v1435_v36 = vld [vmem:[%s5928_s8 + $0x70] sm:$0xff]  ;;  %v1434_v38 = vld [vmem:[%s5928_s8 + $0x68] sm:$0xff] }
 0x2c1   :  { %1258 = vperm.xlu0 %4473, %v1224_v40   ;;  %1298 = vperm.xlu1 %4474, %v1232_v41   ;;  %v1432_v40 = vld [vmem:[%s5928_s8 + $0x58] sm:$0xff]  ;;  %v1431_v41 = vld [vmem:[%s5928_s8 + $0x50] sm:$0xff] }
 0x2c5   :  { %1263 = vperm.xlu0 %4473, %v1225_v42   ;;  %1303 = vperm.xlu1 %4474, %v1233_v43   ;;  %v1430_v42 = vld [vmem:[%s5928_s8 + $0x48] sm:$0xff]  ;;  %v1429_v43 = vld [vmem:[%s5928_s8 + $0x40] sm:$0xff] }
 0x2c9   :  { %1268 = vperm.xlu0 %4473, %v1226_v14   ;;  %1308 = vperm.xlu1 %4474, %v1234_v33   ;;  %v1428_v14 = vld [vmem:[%s5928_s8 + $0x38] sm:$0xff]  ;;  %v1427_v33 = vld [vmem:[%s5928_s8 + $0x30] sm:$0xff] }
 0x2cd   :  { %1273 = vperm.xlu0 %4473, %v1227_v44   ;;  %1313 = vperm.xlu1 %4474, %v1235_v45   ;;  %v1426_v44 = vld [vmem:[%s5928_s8 + $0x28] sm:$0xff]  ;;  %v1425_v45 = vld [vmem:[%s5928_s8 + $0x20] sm:$0xff] }
 0x2d1   :  { %1278 = vperm.xlu0 %4473, %v1228_v46   ;;  %1318 = vperm.xlu1 %4474, %v1236_v47   ;;  %v1424_v46 = vld [vmem:[%s5928_s8 + $0x18] sm:$0xff]  ;;  %v1423_v47 = vld [vmem:[%s5928_s8 + $0x10] sm:$0xff] }
 0x2d5   :  { %1283 = vperm.xlu0 %4473, %v1229_v48   ;;  %1323 = vperm.xlu1 %4474, %v1237_v15  }
 0x2d9   :  { %1288 = vperm.xlu0 %4473, %v1230_v37   ;;  %1328 = vperm.xlu1 %4474, %v1238_v49  }
 0x2dd   :  { %1333 = vperm.xlu1 %4474, %v1239_v50  }
 0x2e1   :  { %1338 = vperm.xlu1 %4474, %v1240_v51  }
 0x31f   :  { %v762_v52 = vpop.permute.xlu0 %761 }
 0x323   :  { %v764_v53 = vpop.permute.xlu1 %763  ;;  %v758_v55 = vpop.permute.xlu0 %757 }
 0x324   :  { %4047 = vmatprep.subr.mxu0 %v764_v53  ;;  %4459 = vmatprep.subr.mxu1 %v764_v53 }
 0x325   :  { %4048 = vmatpush3.msra.mxu0 %v764_v53  ;;  %4464 = vmatpush3.msra.mxu1 %v764_v53 }
 0x326   :  { %4049 = vmatprep.subr.mxu0 %v762_v52  ;;  %4460 = vmatprep.subr.mxu1 %v762_v52 }
 0x327   :  { %4050 = vmatpush3.msra.mxu0 %v762_v52  ;;  %4465 = vmatpush3.msra.mxu1 %v762_v52  ;;  %v760_v54 = vpop.permute.xlu1 %759 }
 0x328   :  { %4051 = vmatprep.subr.mxu0 %v760_v54  ;;  %4461 = vmatprep.subr.mxu1 %v760_v54 }
 0x329   :  { %4052 = vmatpush3.msra.mxu0 %v760_v54  ;;  %4466 = vmatpush3.msra.mxu1 %v760_v54 }
 0x32a   :  { %4053 = vmatprep.subr.mxu0 %v758_v55  ;;  %4462 = vmatprep.subr.mxu1 %v758_v55 }
 0x32b   :  { %4054 = vmatpush3.msra.mxu0 %v758_v55  ;;  %4467 = vmatpush3.msra.mxu1 %v758_v55  ;;  %v756_v56 = vpop.permute.xlu1 %755 }
 0x32c   :  { %4055 = vmatprep.subr.mxu0 %v756_v56  ;;  %4463 = vmatprep.subr.mxu1 %v756_v56 }
 0x32d   :  { %4056 = vmatpush3.msra.mxu0 %v756_v56  ;;  %4468 = vmatpush3.msra.mxu1 %v756_v56 }
 0x32e   :  { %4058 = vmatmul.mubr.msk.f32.vlgmr.msra.gmra.mxu0 %vm770_vm4, %v731_v58  ;;  %4087 = vmatprep.subr.mxu0 %v4884_v31 }
 0x32f   :  { %4088 = vmatpush3.msra.mxu0 %v4884_v31  ;;  %4060 = vmatprep.mubr.msk.f32.mxu0 %vm770_vm4, %v732_v59  ;;  %v725_v31 = vld [vmem:[%s5927_s5 + $0x78] sm:$0xff] }
 0x330   :  { %4089 = vmatprep.subr.mxu0 %v4874_v25  ;;  %4064 = vmatmul.mubr.msk.f32.vlgmr.msra.gmra.mxu1 %vm770_vm4, %v735_v60  ;;  %v1244_v48 = vpop.permute.xlu0 %1243 }
 0x331   :  { %4090 = vmatpush3.msra.mxu0 %v4874_v25  ;;  %4066 = vmatprep.mubr.msk.f32.mxu1 %vm770_vm4, %v736_v61  ;;  %v748_v25 = vld [vmem:[%s5925_s6 + $0x90] sm:$0xff] }
 0x332   :  { %4061 = vmatmul.mubr.msk.f32.gmra.mxu0 %vm770_vm4, %v733_v62  ;;  %4091 = vmatprep.subr.mxu0 %v4893_v35 }
 0x333   :  { %4092 = vmatpush3.msra.mxu0 %v4893_v35  ;;  %4097 = vmatprep.mubr.msk.f32.mxu0 %vm770_vm4, %v710_v63  ;;  %v728_v35 = vld [vmem:[%s5927_s5 + $0x90] sm:$0xff] }
 0x334   :  { %4093 = vmatprep.subr.mxu0 %v4882_v28  ;;  %4067 = vmatmul.mubr.msk.f32.gmra.mxu1 %vm770_vm4, %v737_v57  ;;  %v1249_v37 = vpop.permute.xlu0 %1248 }
 0x335   :  { %4094 = vmatpush3.msra.mxu0 %v4882_v28  ;;  %4069 = vmatprep.mubr.msk.f32.mxu1 %vm770_vm4, %v738_v0  ;;  %v723_v28 = vld [vmem:[%s5927_s5 + $0x68] sm:$0xff] }
 0x336   :  { %4095 = vmatprep.subr.mxu0 %v4900_v29 }
 0x337   :  { %4096 = vmatpush3.msra.mxu0 %v4900_v29  ;;  %v1436_v29 = vld [vmem:[%s5928_s8 + $0x78] sm:$0x1f] }
 0x338   :  { %4098 = vmatmul.mubr.msk.f32.vlgmr.msra.gmra.mxu0 %vm770_vm4, %v711_v1  ;;  %4070 = vmatmul.mubr.msk.f32.gmra.mxu1 %vm770_vm4, %v739_v3  ;;  %v1294_v15 = vpop.permute.xlu1 %1293  ;;  %v1254_v55 = vpop.permute.xlu0 %1253 }
 0x339   :  { %4100 = vmatprep.mubr.msk.f32.mxu0 %vm770_vm4, %v712_v4  ;;  %4072 = vmatprep.mubr.msk.f32.mxu1 %vm770_vm4, %v740_v5 }
 0x33a   :  { %4127 = vmatprep.subr.msk.mxu1 %vm1468_vm5, %v1436_v29 }
 0x33b   :  { %4128 = vmatpush3.msk.msra.mxu1 %vm1468_vm5, %v1436_v29 }
 0x33c   :  { %4101 = vmatmul.mubr.msk.f32.gmra.mxu0 %vm770_vm4, %v713_v6  ;;  %4073 = vmatmul.mubr.msk.f32.gmra.mxu1 %vm770_vm4, %v741_v7  ;;  %v1299_v49 = vpop.permute.xlu1 %1298  ;;  %v1259_v63 = vpop.permute.xlu0 %1258 }
 0x33d   :  { %4103 = vmatprep.mubr.msk.f32.mxu0 %vm770_vm4, %v714_v8  ;;  %4075 = vmatprep.mubr.msk.f32.mxu1 %vm770_vm4, %v742_v9 }
 0x33e   :  { %4129 = vmatprep.subr.mxu1 %v1435_v36 }
 0x33f   :  { %4130 = vmatpush3.msra.mxu1 %v1435_v36 }
 0x340   :  { %4104 = vmatmul.mubr.msk.f32.gmra.mxu0 %vm770_vm4, %v715_v10  ;;  %4076 = vmatmul.mubr.msk.f32.gmra.mxu1 %vm770_vm4, %v743_v16  ;;  %v5170_v56 = vpop.permute.xlu1 %1303  ;;  %v5180_v7 = vpop.permute.xlu0 %1263 }
 0x341   :  { %4106 = vmatprep.mubr.msk.f32.mxu0 %vm770_vm4, %v716_v17  ;;  %4078 = vmatprep.mubr.msk.f32.mxu1 %vm770_vm4, %v744_v18 }
 0x342   :  { %4131 = vmatprep.subr.mxu1 %v1434_v38 }
 0x343   :  { %4132 = vmatpush3.msra.mxu1 %v1434_v38 }
 0x344   :  { %4107 = vmatmul.mubr.msk.f32.gmra.mxu0 %vm770_vm4, %v717_v19  ;;  %4079 = vmatmul.mubr.msk.f32.gmra.mxu1 %vm770_vm4, %v745_v20  ;;  %v1309_v57 = vpop.permute.xlu1 %1308  ;;  %v1269_v18 = vpop.permute.xlu0 %1268 }
 0x345   :  { %4109 = vmatprep.mubr.msk.f32.mxu0 %vm770_vm4, %v718_v11  ;;  %4081 = vmatprep.mubr.msk.f32.mxu1 %vm770_vm4, %v746_v21  ;;  %v1422_v21 = vld [vmem:[%s5928_s8 + $0x8] sm:$0xff] }
 0x346   :  { %4133 = vmatprep.subr.mxu1 %v1433_v39 }
 0x347   :  { %4134 = vmatpush3.msra.mxu1 %v1433_v39 }
 0x348   :  { %4110 = vmatmul.mubr.msk.f32.gmra.mxu0 %vm770_vm4, %v719_v22  ;;  %4082 = vmatmul.mubr.msk.f32.gmra.mxu1 %vm770_vm4, %v747_v23  ;;  %v5182_v8 = vpop.permute.xlu1 %1313  ;;  %v1421_v23 = vld [vmem:[%s5928_s8] sm:$0xff] }
 0x349   :  { %4112 = vmatprep.mubr.msk.f32.mxu0 %vm770_vm4, %v720_v24  ;;  %4084 = vmatprep.mubr.msk.f32.mxu1 %vm770_vm4, %v748_v25 }
 0x34a   :  { %4135 = vmatprep.subr.mxu1 %v1432_v40 }
 0x34b   :  { %4136 = vmatpush3.msra.mxu1 %v1432_v40 }
 0x34c   :  { %4113 = vmatmul.mubr.msk.f32.gmra.mxu0 %vm770_vm4, %v721_v27  ;;  %4085 = vmatmul.mubr.msk.f32.gmra.mxu1 %vm770_vm4, %v749_v12  ;;  %v1319_v19 = vpop.permute.xlu1 %1318  ;;  %v1274_v27 = vpop.permute.xlu0 %1273 }
 0x34d   :  { %4115 = vmatprep.mubr.msk.f32.mxu0 %vm770_vm4, %v722_v26  ;;  %4137 = vmatprep.subr.mxu1 %v1431_v41 }
 0x34e   :  { %4138 = vmatpush3.msra.mxu1 %v1431_v41 }
 0x34f   :  { %4139 = vmatprep.subr.mxu1 %v1430_v42 }
 0x350   :  { %4116 = vmatmul.mubr.msk.f32.gmra.mxu0 %vm770_vm4, %v723_v28  ;;  %4140 = vmatpush3.msra.mxu1 %v1430_v42  ;;  %v5192_v12 = vpop.permute.xlu1 %1323  ;;  %v1279_v40 = vpop.permute.xlu0 %1278 }
 0x351   :  { %4118 = vmatprep.mubr.msk.f32.mxu0 %vm770_vm4, %v724_v30  ;;  %4141 = vmatprep.subr.mxu1 %v1429_v43 }
 0x352   :  { %4142 = vmatpush3.msra.mxu1 %v1429_v43 }
 0x353   :  { %4143 = vmatprep.subr.mxu1 %v1428_v14 }
 0x354   :  { %4119 = vmatmul.mubr.msk.f32.gmra.mxu0 %vm770_vm4, %v725_v31  ;;  %4144 = vmatpush3.msra.mxu1 %v1428_v14  ;;  %v1329_v41 = vpop.permute.xlu1 %1328 }
 0x355   :  { %4121 = vmatprep.mubr.msk.f32.mxu0 %vm770_vm4, %v726_v32  ;;  %4145 = vmatprep.subr.mxu1 %v1427_v33 }
 0x356   :  { %4146 = vmatpush3.msra.mxu1 %v1427_v33 }
 0x357   :  { %4147 = vmatprep.subr.mxu1 %v1426_v44 }
 0x358   :  { %4122 = vmatmul.mubr.msk.f32.gmra.mxu0 %vm770_vm4, %v727_v34  ;;  %4148 = vmatpush3.msra.mxu1 %v1426_v44 }
 0x359   :  { %4124 = vmatprep.mubr.msk.f32.mxu0 %vm770_vm4, %v728_v35  ;;  %4149 = vmatprep.subr.mxu1 %v1425_v45 }
 0x35a   :  { %4150 = vmatpush3.msra.mxu1 %v1425_v45 }
 0x35b   :  { %4151 = vmatprep.subr.mxu1 %v1424_v46 }
 0x35c   :  { %4125 = vmatmul.mubr.msk.f32.gmra.mxu0 %vm770_vm4, %v729_v13  ;;  %4152 = vmatpush3.msra.mxu1 %v1424_v46 }
 0x35d   :  { %4153 = vmatprep.subr.mxu1 %v1423_v47 }
 0x35e   :  { %4154 = vmatpush3.msra.mxu1 %v1423_v47 }
 0x35f   :  { %4155 = vmatprep.subr.mxu1 %v1422_v21 }
 0x360   :  { %4156 = vmatpush3.msra.mxu1 %v1422_v21 }
 0x361   :  { %4157 = vmatprep.subr.mxu1 %v1421_v23 }
 0x362   :  { %4158 = vmatpush3.msra.mxu1 %v1421_v23 }
 0x3ee   :  { %v4059_v50 = vpop.f32.mrf.mxu0 }
 0x3f0   :  { %v897_v51 = vpop.f32.mrf.mxu0  ;;  %v4065_v52 = vpop.f32.mrf.mxu1 }
 0x3f2   :  { %v4062_v53 = vpop.f32.mrf.mxu0  ;;  %v5168_v54 = vpop.f32.mrf.mxu1 }
 0x3f4   :  { %v5172_v58 = vpop.f32.mrf.mxu1  ;;  %v907_v59 = vpop.f32.mrf.mxu0 }
 0x3f6   :  { %v5174_v60 = vpop.f32.mrf.mxu1 }
 0x3f8   :  { %v4099_v61 = vpop.f32.mrf.mxu0  ;;  %v5176_v62 = vpop.f32.mrf.mxu1 }
 0x3f9   :  { %v1128_v26 = vadd.f32 %v4099_v61, %v4059_v50 }
 0x3fa   :  { %v1122_v0 = vpop.f32.mrf.mxu0  ;;  %v5178_v1 = vpop.f32.mrf.mxu1 }
 0x3fb   :  { %v1123_v30 = vadd.f32 %v1122_v0, %v897_v51  ;;  %v1342_v13 = vadd.f32 %v1249_v37, %v1128_v26  ;;  %v1284_v0 = vpop.permute.xlu0 %1283 }
 0x3fc   :  { %v4102_v3 = vpop.f32.mrf.mxu0  ;;  %v4074_v4 = vpop.f32.mrf.mxu1 }
 0x3fd   :  { %v1138_v32 = vadd.f32 %v4102_v3, %v4062_v53  ;;  %v1341_v42 = vadd.f32 %v1244_v48, %v1123_v30  ;;  %v1334_v3 = vpop.permute.xlu1 %1333 }
 0x3fe   :  { %v1132_v5 = vpop.f32.mrf.mxu0  ;;  %v947_v6 = vpop.f32.mrf.mxu1 }
 0x3ff   :  { %v1133_v38 = vadd.f32 %v1132_v5, %v907_v59  ;;  %v1344_v44 = vadd.f32 %v1259_v63, %v1138_v32  ;;  %v1289_v26 = vpop.permute.xlu0 %1288 }
 0x400   :  { %v4105_v9 = vpop.f32.mrf.mxu0  ;;  %v4077_v16 = vpop.f32.mrf.mxu1 }
 0x401   :  { %v1148_v47 = vadd.f32 %v4105_v9, %v4065_v52 }
 0x402   :  { %v1142_v10 = vpop.f32.mrf.mxu0  ;;  %v957_v11 = vpop.f32.mrf.mxu1 }
 0x403   :  { %v1143_v59 = vadd.f32 %v1142_v10, %v5168_v54 }
 0x404   :  { %v4108_v17 = vpop.f32.mrf.mxu0  ;;  %v4080_v25 = vpop.f32.mrf.mxu1 }
 0x405   :  { %v1158_v52 = vadd.f32 %v4108_v17, %v5172_v58  ;;  %v1345_v9 = vadd.f32 %v5180_v7, %v1143_v59  ;;  %v1339_v7 = vpop.permute.xlu1 %1338 }
 0x406   :  { %v1152_v20 = vpop.f32.mrf.mxu0  ;;  %v967_v35 = vpop.f32.mrf.mxu1 }
 0x407   :  { %v1348_v17 = vadd.f32 %v1279_v40, %v1158_v52 }
 0x408   :  { %v4111_v22 = vpop.f32.mrf.mxu0  ;;  %v4083_v46 = vpop.f32.mrf.mxu1 }
 0x40a   :  { %v5190_v24 = vpop.f32.mrf.mxu0 }
 0x40c   :  { %v4114_v28 = vpop.f32.mrf.mxu0 }
 0x40d   :  { %v1178_v31 = vadd.f32 %v4114_v28, %v4074_v4  ;;  %v1346_v4 = vadd.f32 %v1269_v18, %v1148_v47 }
 0x40e   :  { %v1172_v34 = vpop.f32.mrf.mxu0 }
 0x40f   :  { %v1352_v29 = vadd.f32 %v1299_v49, %v1178_v31  ;;  %v1173_v36 = vadd.f32 %v1172_v34, %v947_v6  ;;  %v1343_v49 = vadd.f32 %v1254_v55, %v1133_v38 }
 0x410   :  { %v4117_v39 = vpop.f32.mrf.mxu0 }
 0x411   :  { %v1351_v43 = vadd.f32 %v1294_v15, %v1173_v36  ;;  %v1188_v14 = vadd.f32 %v4117_v39, %v4077_v16  ;;  %v5194_v33 = vmax.f32 %v1342_v13, %v1352_v29 }
 0x412   :  { %v1182_v45 = vpop.f32.mrf.mxu0 }
 0x413   :  { %v1354_v50 = vadd.f32 %v1309_v57, %v1188_v14  ;;  %v1183_v51 = vadd.f32 %v1182_v45, %v957_v11  ;;  %1383 = vrot.lane.b32.xlu1 %v5194_v33, %s4476_s22  ;;  %v5198_v37 = vmax.f32 %v1341_v42, %v1351_v43  ;;  %v977_v57 = vpop.f32.mrf.mxu1 }
 0x414   :  { %v4120_v53 = vpop.f32.mrf.mxu0 }
 0x415   :  { %v1353_v48 = vadd.f32 %v5170_v56, %v1183_v51  ;;  %v1198_v15 = vadd.f32 %v4120_v53, %v4080_v25  ;;  %1381 = vrot.lane.b32.xlu0 %v5198_v37, %s4476_s22  ;;  %v5204_v61 = vmax.f32 %v1344_v44, %v1354_v50  ;;  %v1153_v56 = vadd.f32 %v1152_v20, %v5174_v60  ;;  %v4086_v11 = vpop.f32.mrf.mxu1 }
 0x416   :  { %v1192_v63 = vpop.f32.mrf.mxu0 }
 0x417   :  { %v1356_v5 = vadd.f32 %v1319_v19, %v1198_v15  ;;  %v1193_v55 = vadd.f32 %v1192_v63, %v967_v35  ;;  %1387 = vrot.lane.b32.xlu1 %v5204_v61, %s4476_s22  ;;  %v1363_v54 = vmax.f32 %v1343_v49, %v1353_v48  ;;  %v1168_v19 = vadd.f32 %v4111_v22, %v5176_v62  ;;  %v987_v32 = vpop.f32.mrf.mxu1 }
 0x418   :  { %v4123_v6 = vpop.f32.mrf.mxu0  ;;  %v1347_v60 = vadd.f32 %v1274_v27, %v1153_v56 }
 0x419   :  { %v1355_v10 = vadd.f32 %v5182_v8, %v1193_v55  ;;  %v1208_v16 = vadd.f32 %v4123_v6, %v4083_v46  ;;  %1385 = vrot.lane.b32.xlu0 %v1363_v54, %s4476_s22  ;;  %v1366_v58 = vmax.f32 %v1346_v4, %v1356_v5  ;;  %v1163_v8 = vadd.f32 %v5190_v24, %v5178_v1  ;;  %v1597_v6 = vld [vmem:[%s5929_s9] sm:$0xff] }
 0x41a   :  { %v1202_v18 = vpop.f32.mrf.mxu0  ;;  %v1350_v22 = vadd.f32 %v1289_v26, %v1168_v19  ;;  %v1600_v26 = vld [vmem:[%s5929_s9 + $0x18] sm:$0xff] }
 0x41b   :  { %v1358_v21 = vadd.f32 %v1329_v41, %v1208_v16  ;;  %v1203_v23 = vadd.f32 %v1202_v18, %v977_v57  ;;  %1391 = vrot.lane.b32.xlu1 %v1366_v58, %s4476_s22  ;;  %v1365_v25 = vmax.f32 %v1345_v9, %v1355_v10  ;;  %v1349_v13 = vadd.f32 %v1284_v0, %v1163_v8  ;;  %v1617_v10 = vld [vmem:[%s5930_s10] sm:$0xff]  ;;  %v2139_v8 = vld [vmem:[%s5931_s11 + $0x58] sm:$0xff] }
 0x41c   :  { %v4126_v20 = vpop.f32.mrf.mxu0  ;;  %4194 = vmatprep.mubr.msk.f32.mxu0 %vm1677_vm7, %v1617_v10  ;;  %v1625_v10 = vld [vmem:[%s5930_s10 + $0x40] sm:$0xff] }
 0x41d   :  { %v1357_v28 = vadd.f32 %v5192_v12, %v1203_v23  ;;  %v1218_v30 = vadd.f32 %v4126_v20, %v4086_v11  ;;  %1389 = vrot.lane.b32.xlu0 %v1365_v25, %s4476_s22  ;;  %v1368_v31 = vmax.f32 %v1348_v17, %v1358_v21  ;;  %v2128_v21 = vld [vmem:[%s5931_s11] sm:$0xff]  ;;  %v1598_v23 = vld [vmem:[%s5929_s9 + $0x8] sm:$0xff] }
 0x41e   :  { %v1212_v62 = vpop.f32.mrf.mxu0  ;;  %v2129_v20 = vld [vmem:[%s5931_s11 + $0x8] sm:$0xff] }
 0x41f   :  { %v1360_v34 = vadd.f32 %v1339_v7, %v1218_v30  ;;  %v1213_v35 = vadd.f32 %v1212_v62, %v987_v32  ;;  %1395 = vrot.lane.b32.xlu1 %v1368_v31, %s4476_s22  ;;  %v1367_v27 = vmax.f32 %v1347_v60, %v1357_v28  ;;  %v2138_v60 = vld [vmem:[%s5931_s11 + $0x50] sm:$0xff]  ;;  %v1601_v7 = vld [vmem:[%s5929_s9 + $0x20] sm:$0xff]  ;;  %v1602_v30 = vld [vmem:[%s5929_s9 + $0x28] sm:$0xff] }
 0x420   :  { %v2130_v28 = vld [vmem:[%s5931_s11 + $0x10] sm:$0xff]  ;;  %v2140_v32 = vld [vmem:[%s5931_s11 + $0x60] sm:$0xff]  ;;  %v2131_v62 = vld [vmem:[%s5931_s11 + $0x18] sm:$0xff] }
 0x421   :  { %v1359_v29 = vadd.f32 %v1334_v3, %v1213_v35  ;;  %1393 = vrot.lane.b32.xlu0 %v1367_v27, %s4476_s22  ;;  %v1370_v36 = vmax.f32 %v1350_v22, %v1360_v34  ;;  %v1604_v22 = vld [vmem:[%s5929_s9 + $0x38] sm:$0xff]  ;;  %v1605_v34 = vld [vmem:[%s5929_s9 + $0x40] sm:$0xff]  ;;  %v2141_v35 = vld [vmem:[%s5931_s11 + $0x68] sm:$0xff] }
 0x423   :  { %1399 = vrot.lane.b32.xlu1 %v1370_v36, %s4476_s22  ;;  %v1369_v1 = vmax.f32 %v1349_v13, %v1359_v29  ;;  %v1606_v13 = vld [vmem:[%s5929_s9 + $0x48] sm:$0xff]  ;;  %v1607_v29 = vld [vmem:[%s5929_s9 + $0x50] sm:$0xff] }
 0x425   :  { %1397 = vrot.lane.b32.xlu0 %v1369_v1, %s4476_s22 }
 0x485   :  { %v1384_v24 = vpop.permute.xlu1 %1383 }
 0x486   :  { %v1412_v39 = vmax.f32 %v5194_v33, %v1384_v24  ;;  %v1608_v24 = vld [vmem:[%s5929_s9 + $0x58] sm:$0xff] }
 0x487   :  { %v1382_v12 = vpop.permute.xlu0 %1381 }
 0x488   :  { %v1411_v38 = vmax.f32 %v5198_v37, %v1382_v12  ;;  %v1609_v12 = vld [vmem:[%s5929_s9 + $0x60] sm:$0xff] }
 0x489   :  { %v1388_v40 = vpop.permute.xlu1 %1387 }
 0x48a   :  { %4159 = vmatprep.mubr.msk.f32.mxu1 %vm1437_vm6, %v1411_v38  ;;  %v1414_v43 = vmax.f32 %v5204_v61, %v1388_v40  ;;  %v2143_v38 = vld [vmem:[%s5931_s11 + $0x78] sm:$0xff]  ;;  %v1610_v40 = vld [vmem:[%s5929_s9 + $0x68] sm:$0xff] }
 0x48b   :  { %v1386_v41 = vpop.permute.xlu0 %1385  ;;  %4160 = vmatmul.mubr.msk.f32.vlgmr.msra.gmra.mxu1 %vm1437_vm6, %v1412_v39  ;;  %v2134_v39 = vld [vmem:[%s5931_s11 + $0x30] sm:$0xff] }
 0x48c   :  { %v1413_v42 = vmax.f32 %v1363_v54, %v1386_v41  ;;  %v1611_v41 = vld [vmem:[%s5929_s9 + $0x70] sm:$0xff] }
 0x48d   :  { %v1392_v14 = vpop.permute.xlu1 %1391 }
 0x48e   :  { %4162 = vmatprep.mubr.msk.f32.mxu1 %vm1437_vm6, %v1413_v42  ;;  %v1416_v46 = vmax.f32 %v1366_v58, %v1392_v14  ;;  %v2144_v42 = vld [vmem:[%s5931_s11 + $0x80] sm:$0xff]  ;;  %v1612_v14 = vld [vmem:[%s5929_s9 + $0x78] sm:$0xff] }
 0x48f   :  { %v1390_v44 = vpop.permute.xlu0 %1389  ;;  %4163 = vmatmul.mubr.msk.f32.gmra.mxu1 %vm1437_vm6, %v1414_v43  ;;  %v2135_v43 = vld [vmem:[%s5931_s11 + $0x38] sm:$0xff] }
 0x490   :  { %v1415_v45 = vmax.f32 %v1365_v25, %v1390_v44  ;;  %v1599_v25 = vld [vmem:[%s5929_s9 + $0x10] sm:$0xff]  ;;  %v1613_v44 = vld [vmem:[%s5929_s9 + $0x80] sm:$0xff] }
 0x491   :  { %v1396_v47 = vpop.permute.xlu1 %1395 }
 0x492   :  { %4165 = vmatprep.mubr.msk.f32.mxu1 %vm1437_vm6, %v1415_v45  ;;  %v1418_v51 = vmax.f32 %v1368_v31, %v1396_v47  ;;  %v1603_v31 = vld [vmem:[%s5929_s9 + $0x30] sm:$0xff]  ;;  %v2145_v45 = vld [vmem:[%s5931_s11 + $0x88] sm:$0xff] }
 0x493   :  { %v1394_v33 = vpop.permute.xlu0 %1393  ;;  %4166 = vmatmul.mubr.msk.f32.gmra.mxu1 %vm1437_vm6, %v1416_v46  ;;  %v2136_v46 = vld [vmem:[%s5931_s11 + $0x40] sm:$0xff]  ;;  %v1614_v47 = vld [vmem:[%s5929_s9 + $0x88] sm:$0xff] }
 0x494   :  { %v1417_v50 = vmax.f32 %v1367_v27, %v1394_v33  ;;  %v2132_v27 = vld [vmem:[%s5931_s11 + $0x20] sm:$0xff]  ;;  %v1615_v33 = vld [vmem:[%s5929_s9 + $0x90] sm:$0xff] }
 0x495   :  { %v1400_v37 = vpop.permute.xlu1 %1399 }
 0x496   :  { %4168 = vmatprep.mubr.msk.f32.mxu1 %vm1437_vm6, %v1417_v50  ;;  %v1420_v59 = vmax.f32 %v1370_v36, %v1400_v37  ;;  %v2142_v36 = vld [vmem:[%s5931_s11 + $0x70] sm:$0xff]  ;;  %v1616_v37 = vld [vmem:[%s5929_s9 + $0x98] sm:$0xff] }
 0x497   :  { %v1398_v49 = vpop.permute.xlu0 %1397  ;;  %4169 = vmatmul.mubr.msk.f32.gmra.mxu1 %vm1437_vm6, %v1418_v51  ;;  %v2146_v50 = vld [vmem:[%s5931_s11 + $0x90] sm:$0xff]  ;;  %v2137_v51 = vld [vmem:[%s5931_s11 + $0x48] sm:$0xff] }
 0x498   :  { %v1419_v53 = vmax.f32 %v1369_v1, %v1398_v49  ;;  %v2133_v1 = vld [vmem:[%s5931_s11 + $0x28] sm:$0xff]  ;;  %v2147_v49 = vld [vmem:[%s5931_s11 + $0x98] sm:$0xff] }
 0x49a   :  { %4171 = vmatprep.mubr.msk.f32.mxu1 %vm1437_vm6, %v1419_v53 }
 0x49b   :  { %4172 = vmatmul.mubr.msk.f32.gmra.mxu1 %vm1437_vm6, %v1420_v59 }
 0x49c   :  { %4244 = vmatprep.mubr.msk.f32.mxu1 %vm1677_vm7, %v1597_v6  ;;  %v1623_v6 = vld [vmem:[%s5930_s10 + $0x30] sm:$0xff] }
 0x54b   :  { %v4161_v48 = vpop.f32.mrf.mxu1 }
 0x54c   :  { %v1588_v18 = vmax.f32 %v4161_v48, 0.0 }
 0x54d   :  { %v1538_v15 = vpop.f32.mrf.mxu1 }
 0x54e   :  { %v1587_v19 = vmax.f32 %v1538_v15, 0.0 }
 0x54f   :  { %v4164_v61 = vpop.f32.mrf.mxu1 }
 0x550   :  { %v1590_v17 = vmax.f32 %v4164_v61, 0.0 }
 0x551   :  { %v1548_v52 = vpop.f32.mrf.mxu1 }
 0x552   :  { %v1589_v11 = vmax.f32 %v1548_v52, 0.0 }
 0x553   :  { %v4167_v63 = vpop.f32.mrf.mxu1 }
 0x554   :  { %v1592_v16 = vmax.f32 %v4167_v63, 0.0 }
 0x555   :  { %v1558_v57 = vpop.f32.mrf.mxu1 }
 0x556   :  { %v1591_v58 = vmax.f32 %v1558_v57, 0.0 }
 0x557   :  { %v4170_v0 = vpop.f32.mrf.mxu1 }
 0x558   :  { %v1594_v56 = vmax.f32 %v4170_v0, 0.0 }
 0x559   :  { %v1568_v3 = vpop.f32.mrf.mxu1 }
 0x55a   :  { %v1593_v9 = vmax.f32 %v1568_v3, 0.0 }
 0x55b   :  { %v4173_v4 = vpop.f32.mrf.mxu1 }
 0x55c   :  { %v1596_v5 = vmax.f32 %v4173_v4, 0.0  ;;  %v1618_v4 = vld [vmem:[%s5930_s10 + $0x8] sm:$0xff] }
 0x55d   :  { %v1578_v55 = vpop.f32.mrf.mxu1 }
 0x55e   :  { %v1595_v54 = vmax.f32 %v1578_v55, 0.0  ;;  %1665 = vrot.lane.b32.xlu0 %v1596_v5, %s4476_s22  ;;  %4224 = vmatprep.subr.mxu1 %v1596_v5  ;;  %v1620_v55 = vld [vmem:[%s5930_s10 + $0x18] sm:$0xff] }
 0x55f   :  { %4225 = vmatpush3.msra.mxu1 %v1596_v5  ;;  %v1619_v5 = vld [vmem:[%s5930_s10 + $0x10] sm:$0xff] }
 0x560   :  { %1663 = vrot.lane.b32.xlu1 %v1595_v54, %s4476_s22  ;;  %4226 = vmatprep.subr.mxu1 %v1595_v54 }
 0x561   :  { %4227 = vmatpush3.msra.mxu1 %v1595_v54  ;;  %v1621_v54 = vld [vmem:[%s5930_s10 + $0x20] sm:$0xff] }
 0x562   :  { %1661 = vrot.lane.b32.xlu0 %v1594_v56, %s4476_s22  ;;  %4228 = vmatprep.subr.mxu1 %v1594_v56 }
 0x563   :  { %4229 = vmatpush3.msra.mxu1 %v1594_v56  ;;  %v1622_v56 = vld [vmem:[%s5930_s10 + $0x28] sm:$0xff] }
 0x564   :  { %1659 = vrot.lane.b32.xlu1 %v1593_v9, %s4476_s22  ;;  %4230 = vmatprep.subr.mxu1 %v1593_v9 }
 0x565   :  { %4231 = vmatpush3.msra.mxu1 %v1593_v9  ;;  %v1624_v9 = vld [vmem:[%s5930_s10 + $0x38] sm:$0xff] }
 0x566   :  { %1657 = vrot.lane.b32.xlu0 %v1592_v16, %s4476_s22  ;;  %4232 = vmatprep.subr.mxu1 %v1592_v16 }
 0x567   :  { %4233 = vmatpush3.msra.mxu1 %v1592_v16  ;;  %v1626_v16 = vld [vmem:[%s5930_s10 + $0x48] sm:$0xff] }
 0x568   :  { %1655 = vrot.lane.b32.xlu1 %v1591_v58, %s4476_s22  ;;  %4234 = vmatprep.subr.mxu1 %v1591_v58 }
 0x569   :  { %4235 = vmatpush3.msra.mxu1 %v1591_v58  ;;  %v1627_v58 = vld [vmem:[%s5930_s10 + $0x50] sm:$0xff] }
 0x56a   :  { %1653 = vrot.lane.b32.xlu0 %v1590_v17, %s4476_s22  ;;  %4236 = vmatprep.subr.mxu1 %v1590_v17 }
 0x56b   :  { %4237 = vmatpush3.msra.mxu1 %v1590_v17  ;;  %v1628_v17 = vld [vmem:[%s5930_s10 + $0x58] sm:$0xff] }
 0x56c   :  { %1651 = vrot.lane.b32.xlu1 %v1589_v11, %s4476_s22  ;;  %4238 = vmatprep.subr.mxu1 %v1589_v11 }
 0x56d   :  { %4239 = vmatpush3.msra.mxu1 %v1589_v11  ;;  %v1629_v11 = vld [vmem:[%s5930_s10 + $0x60] sm:$0xff] }
 0x56e   :  { %1649 = vrot.lane.b32.xlu0 %v1588_v18, %s4476_s22  ;;  %4240 = vmatprep.subr.mxu1 %v1588_v18 }
 0x56f   :  { %4241 = vmatpush3.msra.mxu1 %v1588_v18  ;;  %v1630_v18 = vld [vmem:[%s5930_s10 + $0x68] sm:$0xff] }
 0x570   :  { %1647 = vrot.lane.b32.xlu1 %v1587_v19, %s4476_s22  ;;  %4242 = vmatprep.subr.mxu1 %v1587_v19 }
 0x571   :  { %4243 = vmatpush3.msra.mxu1 %v1587_v19  ;;  %v1631_v19 = vld [vmem:[%s5930_s10 + $0x70] sm:$0xff] }
 0x572   :  { %2150 = vperm.xlu0 %4473, %v2128_v21   ;;  %4245 = vmatmul.mubr.msk.f32.vlgmr.msra.gmra.mxu1 %vm1677_vm7, %v1598_v23  ;;  %v1632_v21 = vld [vmem:[%s5930_s10 + $0x78] sm:$0xff]  ;;  %v1633_v23 = vld [vmem:[%s5930_s10 + $0x80] sm:$0xff] }
 0x573   :  { %4247 = vmatprep.mubr.msk.f32.mxu1 %vm1677_vm7, %v1599_v25  ;;  %4305 = vmatprep.subr.mxu1 %v4475_v2  ;;  %v1634_v25 = vld [vmem:[%s5930_s10 + $0x88] sm:$0xff] }
 0x574   :  { %2200 = vperm.xlu1 %4474, %v2138_v60   ;;  %v1635_v60 = vld [vmem:[%s5930_s10 + $0x90] sm:$0xff] }
 0x576   :  { %2155 = vperm.xlu0 %4473, %v2129_v20   ;;  %4248 = vmatmul.mubr.msk.f32.gmra.mxu1 %vm1677_vm7, %v1600_v26  ;;  %v1636_v20 = vld [vmem:[%s5930_s10 + $0x98] sm:$0xff] }
 0x577   :  { %4250 = vmatprep.mubr.msk.f32.mxu1 %vm1677_vm7, %v1601_v7  ;;  %v2335_v26 = vld [vmem:[%s5932_s12 + $0x38] sm:$0x1f]  ;;  %v2334_v7 = vld [vmem:[%s5932_s12 + $0x30] sm:$0xff] }
 0x578   :  { %2205 = vperm.xlu1 %4474, %v2139_v8   ;;  %v2333_v8 = vld [vmem:[%s5932_s12 + $0x28] sm:$0xff] }
 0x57a   :  { %2160 = vperm.xlu0 %4473, %v2130_v28   ;;  %4251 = vmatmul.mubr.msk.f32.gmra.mxu1 %vm1677_vm7, %v1602_v30  ;;  %v2332_v28 = vld [vmem:[%s5932_s12 + $0x20] sm:$0xff]  ;;  %v2331_v30 = vld [vmem:[%s5932_s12 + $0x18] sm:$0xff] }
 0x57b   :  { %4253 = vmatprep.mubr.msk.f32.mxu1 %vm1677_vm7, %v1603_v31  ;;  %v2330_v31 = vld [vmem:[%s5932_s12 + $0x10] sm:$0xff] }
 0x57c   :  { %2210 = vperm.xlu1 %4474, %v2140_v32  }
 0x57e   :  { %2165 = vperm.xlu0 %4473, %v2131_v62   ;;  %4254 = vmatmul.mubr.msk.f32.gmra.mxu1 %vm1677_vm7, %v1604_v22 }
 0x57f   :  { %4256 = vmatprep.mubr.msk.f32.mxu1 %vm1677_vm7, %v1605_v34 }
 0x580   :  { %2215 = vperm.xlu1 %4474, %v2141_v35  }
 0x582   :  { %2170 = vperm.xlu0 %4473, %v2132_v27   ;;  %4257 = vmatmul.mubr.msk.f32.gmra.mxu1 %vm1677_vm7, %v1606_v13 }
 0x583   :  { %4259 = vmatprep.mubr.msk.f32.mxu1 %vm1677_vm7, %v1607_v29 }
 0x584   :  { %2220 = vperm.xlu1 %4474, %v2142_v36  }
 0x586   :  { %2175 = vperm.xlu0 %4473, %v2133_v1   ;;  %4260 = vmatmul.mubr.msk.f32.gmra.mxu1 %vm1677_vm7, %v1608_v24 }
 0x587   :  { %4262 = vmatprep.mubr.msk.f32.mxu1 %vm1677_vm7, %v1609_v12 }
 0x588   :  { %2225 = vperm.xlu1 %4474, %v2143_v38  }
 0x58a   :  { %2180 = vperm.xlu0 %4473, %v2134_v39   ;;  %4263 = vmatmul.mubr.msk.f32.gmra.mxu1 %vm1677_vm7, %v1610_v40 }
 0x58b   :  { %4265 = vmatprep.mubr.msk.f32.mxu1 %vm1677_vm7, %v1611_v41 }
 0x58c   :  { %2230 = vperm.xlu1 %4474, %v2144_v42  }
 0x58e   :  { %2185 = vperm.xlu0 %4473, %v2135_v43   ;;  %4266 = vmatmul.mubr.msk.f32.gmra.mxu1 %vm1677_vm7, %v1612_v14 }
 0x58f   :  { %4268 = vmatprep.mubr.msk.f32.mxu1 %vm1677_vm7, %v1613_v44 }
 0x590   :  { %2235 = vperm.xlu1 %4474, %v2145_v45  }
 0x592   :  { %2190 = vperm.xlu0 %4473, %v2136_v46   ;;  %4269 = vmatmul.mubr.msk.f32.gmra.mxu1 %vm1677_vm7, %v1614_v47 }
 0x593   :  { %4271 = vmatprep.mubr.msk.f32.mxu1 %vm1677_vm7, %v1615_v33 }
 0x594   :  { %2240 = vperm.xlu1 %4474, %v2146_v50  }
 0x596   :  { %2195 = vperm.xlu0 %4473, %v2137_v51   ;;  %4272 = vmatmul.mubr.msk.f32.gmra.mxu1 %vm1677_vm7, %v1616_v37 }
 0x597   :  { %4313 = vmatprep.mubr.msk.f32.mxu1 %vm4478_vm11, %v4475_v2 }
 0x598   :  { %2245 = vperm.xlu1 %4474, %v2147_v49  }
 0x5d0   :  { %v1666_v53 = vpop.permute.xlu0 %1665 }
 0x5d1   :  { %4174 = vmatprep.subr.mxu0 %v1666_v53 }
 0x5d2   :  { %4175 = vmatpush3.msra.mxu0 %v1666_v53  ;;  %v1664_v59 = vpop.permute.xlu1 %1663 }
 0x5d3   :  { %4176 = vmatprep.subr.mxu0 %v1664_v59 }
 0x5d4   :  { %v1662_v48 = vpop.permute.xlu0 %1661  ;;  %4177 = vmatpush3.msra.mxu0 %v1664_v59 }
 0x5d5   :  { %4178 = vmatprep.subr.mxu0 %v1662_v48 }
 0x5d6   :  { %4179 = vmatpush3.msra.mxu0 %v1662_v48  ;;  %v1660_v15 = vpop.permute.xlu1 %1659 }
 0x5d7   :  { %4180 = vmatprep.subr.mxu0 %v1660_v15 }
 0x5d8   :  { %v1658_v61 = vpop.permute.xlu0 %1657  ;;  %4181 = vmatpush3.msra.mxu0 %v1660_v15 }
 0x5d9   :  { %4182 = vmatprep.subr.mxu0 %v1658_v61 }
 0x5da   :  { %4183 = vmatpush3.msra.mxu0 %v1658_v61  ;;  %v1656_v52 = vpop.permute.xlu1 %1655 }
 0x5db   :  { %4184 = vmatprep.subr.mxu0 %v1656_v52 }
 0x5dc   :  { %v1654_v63 = vpop.permute.xlu0 %1653  ;;  %4185 = vmatpush3.msra.mxu0 %v1656_v52 }
 0x5dd   :  { %4186 = vmatprep.subr.mxu0 %v1654_v63 }
 0x5de   :  { %4187 = vmatpush3.msra.mxu0 %v1654_v63  ;;  %v1652_v57 = vpop.permute.xlu1 %1651  ;;  %v2329_v63 = vld [vmem:[%s5932_s12 + $0x8] sm:$0xff] }
 0x5df   :  { %4188 = vmatprep.subr.mxu0 %v1652_v57 }
 0x5e0   :  { %v1650_v0 = vpop.permute.xlu0 %1649  ;;  %4189 = vmatpush3.msra.mxu0 %v1652_v57 }
 0x5e1   :  { %4190 = vmatprep.subr.mxu0 %v1650_v0 }
 0x5e2   :  { %4191 = vmatpush3.msra.mxu0 %v1650_v0  ;;  %v1648_v3 = vpop.permute.xlu1 %1647 }
 0x5e3   :  { %4192 = vmatprep.subr.mxu0 %v1648_v3 }
 0x5e4   :  { %4193 = vmatpush3.msra.mxu0 %v1648_v3  ;;  %v2328_v3 = vld [vmem:[%s5932_s12] sm:$0xff] }
 0x5e5   :  { %4195 = vmatmul.mubr.msk.f32.vlgmr.msra.gmra.mxu0 %vm1677_vm7, %v1618_v4  ;;  %4274 = vmatprep.subr.msk.mxu0 %vm1468_vm5, %v2335_v26 }
 0x5e6   :  { %4197 = vmatprep.mubr.msk.f32.mxu0 %vm1677_vm7, %v1619_v5  ;;  %4275 = vmatpush3.msk.msra.mxu0 %vm1468_vm5, %v2335_v26 }
 0x5e7   :  { %4276 = vmatprep.subr.mxu0 %v2334_v7 }
 0x5e8   :  { %4277 = vmatpush3.msra.mxu0 %v2334_v7 }
 0x5e9   :  { %4198 = vmatmul.mubr.msk.f32.gmra.mxu0 %vm1677_vm7, %v1620_v55  ;;  %4278 = vmatprep.subr.mxu0 %v2333_v8 }
 0x5ea   :  { %4200 = vmatprep.mubr.msk.f32.mxu0 %vm1677_vm7, %v1621_v54  ;;  %4279 = vmatpush3.msra.mxu0 %v2333_v8 }
 0x5eb   :  { %4280 = vmatprep.subr.mxu0 %v2332_v28 }
 0x5ec   :  { %4281 = vmatpush3.msra.mxu0 %v2332_v28 }
 0x5ed   :  { %4201 = vmatmul.mubr.msk.f32.gmra.mxu0 %vm1677_vm7, %v1622_v56  ;;  %4282 = vmatprep.subr.mxu0 %v2331_v30  ;;  %v2151_v13 = vpop.permute.xlu0 %2150 }
 0x5ee   :  { %4203 = vmatprep.mubr.msk.f32.mxu0 %vm1677_vm7, %v1623_v6  ;;  %4283 = vmatpush3.msra.mxu0 %v2331_v30 }
 0x5ef   :  { %4284 = vmatprep.subr.mxu0 %v2330_v31  ;;  %v2201_v29 = vpop.permute.xlu1 %2200 }
 0x5f0   :  { %4285 = vmatpush3.msra.mxu0 %v2330_v31 }
 0x5f1   :  { %4204 = vmatmul.mubr.msk.f32.gmra.mxu0 %vm1677_vm7, %v1624_v9  ;;  %v2156_v1 = vpop.permute.xlu0 %2155  ;;  %4286 = vmatprep.subr.mxu0 %v2329_v63 }
 0x5f2   :  { %4206 = vmatprep.mubr.msk.f32.mxu0 %vm1677_vm7, %v1625_v10  ;;  %4287 = vmatpush3.msra.mxu0 %v2329_v63 }
 0x5f3   :  { %v2206_v24 = vpop.permute.xlu1 %2205  ;;  %4288 = vmatprep.subr.mxu0 %v2328_v3 }
 0x5f4   :  { %4289 = vmatpush3.msra.mxu0 %v2328_v3 }
 0x5f5   :  { %4207 = vmatmul.mubr.msk.f32.gmra.mxu0 %vm1677_vm7, %v1626_v16  ;;  %v2161_v39 = vpop.permute.xlu0 %2160  ;;  %4338 = vmatprep.subr.mxu0 %v4475_v2 }
 0x5f6   :  { %4209 = vmatprep.mubr.msk.f32.mxu0 %vm1677_vm7, %v1627_v58 }
 0x5f7   :  { %v2211_v40 = vpop.permute.xlu1 %2210 }
 0x5f9   :  { %4210 = vmatmul.mubr.msk.f32.gmra.mxu0 %vm1677_vm7, %v1628_v17  ;;  %v2166_v43 = vpop.permute.xlu0 %2165 }
 0x5fa   :  { %4212 = vmatprep.mubr.msk.f32.mxu0 %vm1677_vm7, %v1629_v11 }
 0x5fb   :  { %v2216_v14 = vpop.permute.xlu1 %2215 }
 0x5fd   :  { %4213 = vmatmul.mubr.msk.f32.gmra.mxu0 %vm1677_vm7, %v1630_v18  ;;  %v5499_v50 = vpop.permute.xlu0 %2170 }
 0x5fe   :  { %4215 = vmatprep.mubr.msk.f32.mxu0 %vm1677_vm7, %v1631_v19 }
 0x5ff   :  { %v5501_v51 = vpop.permute.xlu1 %2220 }
 0x601   :  { %4216 = vmatmul.mubr.msk.f32.gmra.mxu0 %vm1677_vm7, %v1632_v21  ;;  %v2176_v15 = vpop.permute.xlu0 %2175 }
 0x602   :  { %4218 = vmatprep.mubr.msk.f32.mxu0 %vm1677_vm7, %v1633_v23 }
 0x603   :  { %v2226_v61 = vpop.permute.xlu1 %2225 }
 0x605   :  { %4219 = vmatmul.mubr.msk.f32.gmra.mxu0 %vm1677_vm7, %v1634_v25  ;;  %v5511_v5 = vpop.permute.xlu0 %2180 }
 0x606   :  { %4221 = vmatprep.mubr.msk.f32.mxu0 %vm1677_vm7, %v1635_v60 }
 0x607   :  { %v5513_v55 = vpop.permute.xlu1 %2230 }
 0x609   :  { %4222 = vmatmul.mubr.msk.f32.gmra.mxu0 %vm1677_vm7, %v1636_v20  ;;  %v2186_v25 = vpop.permute.xlu0 %2185 }
 0x60b   :  { %v2236_v60 = vpop.permute.xlu1 %2235 }
 0x632   :  { %v4246_v32 = vpop.f32.mrf.mxu1 }
 0x634   :  { %v2029_v62 = vpop.f32.mrf.mxu1 }
 0x636   :  { %v4249_v22 = vpop.f32.mrf.mxu1 }
 0x638   :  { %v2039_v34 = vpop.f32.mrf.mxu1 }
 0x63a   :  { %v5487_v35 = vpop.f32.mrf.mxu1 }
 0x63c   :  { %v5489_v27 = vpop.f32.mrf.mxu1 }
 0x63e   :  { %v5491_v36 = vpop.f32.mrf.mxu1 }
 0x640   :  { %v5493_v12 = vpop.f32.mrf.mxu1 }
 0x642   :  { %v5495_v38 = vpop.f32.mrf.mxu1 }
 0x644   :  { %v5497_v41 = vpop.f32.mrf.mxu1 }
 0x646   :  { %v4261_v45 = vpop.f32.mrf.mxu1 }
 0x648   :  { %v2079_v33 = vpop.f32.mrf.mxu1 }
 0x64a   :  { %v4264_v49 = vpop.f32.mrf.mxu1 }
 0x64c   :  { %v2089_v48 = vpop.f32.mrf.mxu1 }
 0x64e   :  { %v4267_v0 = vpop.f32.mrf.mxu1 }
 0x650   :  { %v2099_v6 = vpop.f32.mrf.mxu1 }
 0x652   :  { %v4270_v23 = vpop.f32.mrf.mxu1 }
 0x6a5   :  { %v4196_v42 = vpop.f32.mrf.mxu0 }
 0x6a6   :  { %v2035_v54 = vadd.f32 %v4246_v32, %v4196_v42 }
 0x6a7   :  { %v1804_v44 = vpop.f32.mrf.mxu0 }
 0x6a8   :  { %v2030_v9 = vadd.f32 %v2029_v62, %v1804_v44  ;;  %v2249_v17 = vadd.f32 %v2156_v1, %v2035_v54  ;;  %v2191_v44 = vpop.permute.xlu0 %2190  ;;  %v5549_v54 = vld [vmem:[%s5933_s13 + $0x18] sm:$0xff] }
 0x6a9   :  { %v4199_v46 = vpop.f32.mrf.mxu0  ;;  %4306 = vmatpush3.msk.msra.mxu1 %vm2539_vm8, %v5549_v54 }
 0x6aa   :  { %v2045_v16 = vadd.f32 %v4249_v22, %v4199_v46  ;;  %v2248_v20 = vadd.f32 %v2151_v13, %v2030_v9  ;;  %4307 = vmatprep.subr.mxu1 %v4475_v2 }
 0x6ab   :  { %v1814_v47 = vpop.f32.mrf.mxu0 }
 0x6ac   :  { %v2040_v19 = vadd.f32 %v2039_v34, %v1814_v47  ;;  %v2251_v28 = vadd.f32 %v2166_v43, %v2045_v16 }
 0x6ad   :  { %v4202_v37 = vpop.f32.mrf.mxu0 }
 0x6ae   :  { %v2055_v31 = vadd.f32 %v5487_v35, %v4202_v37  ;;  %v2250_v34 = vadd.f32 %v2161_v39, %v2040_v19  ;;  %v2509_v19 = vld [vmem:[%s5933_s13 + $0x70] sm:$0xff] }
 0x6af   :  { %v1824_v53 = vpop.f32.mrf.mxu0 }
 0x6b0   :  { %v2050_v13 = vadd.f32 %v5489_v27, %v1824_v53  ;;  %v2253_v46 = vadd.f32 %v2176_v15, %v2055_v31 }
 0x6b1   :  { %v4205_v59 = vpop.f32.mrf.mxu0 }
 0x6b2   :  { %v2065_v35 = vadd.f32 %v5491_v36, %v4205_v59 }
 0x6b3   :  { %v1834_v52 = vpop.f32.mrf.mxu0 }
 0x6b4   :  { %v2060_v27 = vadd.f32 %v5493_v12, %v1834_v52 }
 0x6b5   :  { %v4208_v57 = vpop.f32.mrf.mxu0 }
 0x6b6   :  { %v2075_v15 = vadd.f32 %v5495_v38, %v4208_v57  ;;  %v2497_v38 = vld [vmem:[%s5933_s13 + $0x10] sm:$0xff]  ;;  %v2196_v57 = vpop.permute.xlu0 %2195 }
 0x6b7   :  { %v5509_v4 = vpop.f32.mrf.mxu0  ;;  %4308 = vmatpush3.msra.mxu1 %v2497_v38 }
 0x6b8   :  { %4309 = vmatprep.subr.mxu1 %v4475_v2 }
 0x6b9   :  { %v4211_v56 = vpop.f32.mrf.mxu0 }
 0x6ba   :  { %v2085_v10 = vadd.f32 %v4261_v45, %v4211_v56  ;;  %v2241_v45 = vpop.permute.xlu1 %2240 }
 0x6bb   :  { %v1854_v58 = vpop.f32.mrf.mxu0 }
 0x6bc   :  { %v2259_v11 = vadd.f32 %v2206_v24, %v2085_v10  ;;  %v2080_v18 = vadd.f32 %v2079_v33, %v1854_v58  ;;  %v2109_v24 = vpop.f32.mrf.mxu1 }
 0x6bd   :  { %v4214_v21 = vpop.f32.mrf.mxu0 }
 0x6be   :  { %v2258_v26 = vadd.f32 %v2201_v29, %v2080_v18  ;;  %v2095_v7 = vadd.f32 %v4264_v49, %v4214_v21  ;;  %v5516_v8 = vmax.f32 %v2249_v17, %v2259_v11  ;;  %v4273_v37 = vpop.f32.mrf.mxu1  ;;  %v2252_v49 = vadd.f32 %v5499_v50, %v2050_v13  ;;  %v5570_v21 = vld [vmem:[%s5933_s13 + $0x78] sm:$0xff] }
 0x6bf   :  { %v1864_v30 = vpop.f32.mrf.mxu0  ;;  %v2254_v50 = vadd.f32 %v5511_v5, %v2060_v27 }
 0x6c0   :  { %v2261_v32 = vadd.f32 %v2216_v14, %v2095_v7  ;;  %v2090_v62 = vadd.f32 %v2089_v48, %v1864_v30  ;;  %2290 = vrot.lane.b32.xlu1 %v5516_v8, %s4476_s22  ;;  %v5521_v22 = vmax.f32 %v2248_v20, %v2258_v26  ;;  %v2255_v48 = vadd.f32 %v2186_v25, %v2065_v35  ;;  %v2119_v3 = vpop.f32.mrf.mxu1 }
 0x6c1   :  { %v4217_v1 = vpop.f32.mrf.mxu0  ;;  %v2816_v25 = vrot.slane %v2509_v19, 5  ;;  %v5662_v19 = vld [vmem:[%s5933_s13 + $0x98] sm:$0xff] }
 0x6c2   :  { %v2260_v29 = vadd.f32 %v2211_v40, %v2090_v62  ;;  %v2105_v42 = vadd.f32 %v4267_v0, %v4217_v1  ;;  %2288 = vrot.lane.b32.xlu0 %v5521_v22, %s4476_s22  ;;  %v5526_v43 = vmax.f32 %v2251_v28, %v2261_v32 }
 0x6c3   :  { %v1874_v14 = vpop.f32.mrf.mxu0 }
 0x6c4   :  { %v2263_v47 = vadd.f32 %v2226_v61, %v2105_v42  ;;  %v2100_v33 = vadd.f32 %v2099_v6, %v1874_v14  ;;  %2294 = vrot.lane.b32.xlu1 %v5526_v43, %s4476_s22  ;;  %v5531_v39 = vmax.f32 %v2250_v34, %v2260_v29 }
 0x6c5   :  { %v4220_v40 = vpop.f32.mrf.mxu0 }
 0x6c6   :  { %v2262_v53 = vadd.f32 %v5501_v51, %v2100_v33  ;;  %v2115_v36 = vadd.f32 %v4270_v23, %v4220_v40  ;;  %2292 = vrot.lane.b32.xlu0 %v5531_v39, %s4476_s22  ;;  %v5538_v59 = vmax.f32 %v2253_v46, %v2263_v47  ;;  %v2070_v51 = vadd.f32 %v5497_v41, %v5509_v4  ;;  %v2246_v41 = vpop.permute.xlu1 %2245  ;;  %v2507_v47 = vld [vmem:[%s5933_s13 + $0x60] sm:$0xff]  ;;  %v2496_v33 = vld [vmem:[%s5933_s13 + $0x8] sm:$0xff] }
 0x6c7   :  { %v1884_v61 = vpop.f32.mrf.mxu0  ;;  %v2257_v4 = vadd.f32 %v2196_v57, %v2075_v15  ;;  %v2812_v27 = vrot.slane %v2507_v47, 5  ;;  %4310 = vmatpush3.msra.mxu1 %v2496_v33  ;;  %v2495_v40 = vld [vmem:[%s5933_s13] sm:$0xff]  ;;  %v2500_v15 = vld [vmem:[%s5933_s13 + $0x28] sm:$0xff]  ;;  %v5713_v47 = vld [vmem:[%s5933_s13 + $0xd8] sm:$0xff] }
 0x6c8   :  { %v2265_v63 = vadd.f32 %v2236_v60, %v2115_v36  ;;  %v2110_v0 = vadd.f32 %v2109_v24, %v1884_v61  ;;  %2298 = vrot.lane.b32.xlu1 %v5538_v59, %s4476_s22  ;;  %v2272_v12 = vmax.f32 %v2252_v49, %v2262_v53  ;;  %v2818_v60 = vrot.slane %v5570_v21, 5  ;;  %4311 = vmatprep.subr.mxu1 %v4475_v2  ;;  %v5610_v49 = vld [vmem:[%s5933_s13 + $0x58] sm:$0xff]  ;;  %v2517_v61 = vld [vmem:[%s5933_s13 + $0xb0] sm:$0xff] }
 0x6c9   :  { %v4223_v52 = vpop.f32.mrf.mxu0  ;;  %4312 = vmatpush3.msra.mxu1 %v2495_v40  ;;  %v2811_v53 = vrot.slane %v5610_v49, 5  ;;  %v3001_v38 = vrot.slane %v2517_v61, 3  ;;  %v2511_v61 = vld [vmem:[%s5933_s13 + $0x80] sm:$0xff] }
 0x6ca   :  { %v2264_v56 = vadd.f32 %v5513_v55, %v2110_v0  ;;  %v2125_v6 = vadd.f32 %v4273_v37, %v4223_v52  ;;  %2296 = vrot.lane.b32.xlu0 %v2272_v12, %s4476_s22  ;;  %v2275_v5 = vmax.f32 %v2255_v48, %v2265_v63  ;;  %v2256_v55 = vadd.f32 %v2191_v44, %v2070_v51  ;;  %v5627_v48 = vld [vmem:[%s5933_s13 + $0x38] sm:$0xff]  ;;  %v2499_v51 = vld [vmem:[%s5933_s13 + $0x20] sm:$0xff]  ;;  %v2516_v52 = vld [vmem:[%s5933_s13 + $0xa8] sm:$0xff] }
 0x6cb   :  { %v1894_v9 = vpop.f32.mrf.mxu0  ;;  %v2819_v30 = vsel %vm2810_vm9, %v2816_v25, %v2818_v60  ;;  %4316 = vmatprep.subr.mxu1 %v4475_v2  ;;  %v2813_v36 = vsel %vm2810_vm9, %v2811_v53, %v2812_v27  ;;  %v5638_v63 = vld [vmem:[%s5933_s13 + $0xb8] sm:$0xff] }
 0x6cc   :  { %v2267_v10 = vadd.f32 %v2246_v41, %v2125_v6  ;;  %v2120_v16 = vadd.f32 %v2119_v3, %v1894_v9  ;;  %2302 = vrot.lane.b32.xlu1 %v2275_v5, %s4476_s22  ;;  %v2274_v58 = vmax.f32 %v2254_v50, %v2264_v56  ;;  %v2628_v3 = vrot.slane %v2500_v15, 7  ;;  %v2515_v6 = vld [vmem:[%s5933_s13 + $0xa0] sm:$0xff] }
 0x6cd   :  { %v3003_v57 = vrot.slane %v5638_v63, 3  ;;  %v2999_v9 = vrot.slane %v2516_v52, 3 }
 0x6ce   :  { %v2277_v17 = vmax.f32 %v2257_v4, %v2267_v10  ;;  %v2266_v11 = vadd.f32 %v2241_v45, %v2120_v16  ;;  %2300 = vrot.lane.b32.xlu0 %v2274_v58, %s4476_s22  ;;  %v2508_v45 = vld [vmem:[%s5933_s13 + $0x68] sm:$0xff]  ;;  %v2626_v4 = vrot.slane %v2499_v51, 7  ;;  %v2625_v10 = vrot.slane %v5549_v54, 7 }
 0x6cf   :  { %v2814_v46 = vrot.slane %v2508_v45, 5  ;;  %v2725_v54 = vrot.slane %v5610_v49, 6  ;;  %v3002_v60 = vsel %vm1468_vm5, %v2999_v9, %v3001_v38  ;;  %v2513_v45 = vld [vmem:[%s5933_s13 + $0x90] sm:$0xff]  ;;  %v2512_v49 = vld [vmem:[%s5933_s13 + $0x88] sm:$0xff] }
 0x6d0   :  { %2306 = vrot.lane.b32.xlu1 %v2277_v17, %s4476_s22  ;;  %v2276_v18 = vmax.f32 %v2256_v55, %v2266_v11  ;;  %v3004_v11 = vsel %vm1468_vm5, %v3001_v38, %v3003_v57 }
 0x6d1   :  { %v2815_v37 = vsel %vm2810_vm9, %v2812_v27, %v2814_v46  ;;  %v2911_v27 = vrot.slane %v5662_v19, 4 }
 0x6d2   :  { %2304 = vrot.lane.b32.xlu0 %v2276_v18, %s4476_s22 }
 0x732   :  { %v2291_v23 = vpop.permute.xlu1 %2290 }
 0x733   :  { %v2319_v7 = vmax.f32 %v5516_v8, %v2291_v23 }
 0x734   :  { %v2289_v20 = vpop.permute.xlu0 %2288 }
 0x735   :  { %v2318_v26 = vmax.f32 %v5521_v22, %v2289_v20 }
 0x736   :  { %v2295_v28 = vpop.permute.xlu1 %2294 }
 0x737   :  { %4290 = vmatprep.mubr.msk.f32.mxu0 %vm2336_vm10, %v2318_v26  ;;  %v2321_v62 = vmax.f32 %v5526_v43, %v2295_v28  ;;  %v2504_v26 = vld [vmem:[%s5933_s13 + $0x48] sm:$0xff]  ;;  %v2627_v28 = vsel %vm2624_vm12, %v2625_v10, %v2626_v4  ;;  %v2521_v10 = vld [vmem:[%s5933_s13 + $0xd0] sm:$0xff] }
 0x738   :  { %4291 = vmatmul.mubr.msk.f32.vlgmr.msra.gmra.mxu0 %vm2336_vm10, %v2319_v7  ;;  %v2293_v31 = vpop.permute.xlu0 %2292  ;;  %v2996_v7 = vrot.slane %v5662_v19, 3  ;;  %v3093_v19 = vrot.slane %v2521_v10, 2 }
 0x739   :  { %v2320_v32 = vmax.f32 %v5531_v39, %v2293_v31  ;;  %4339 = vmatpush3.msk.msra.mxu0 %vm2539_vm8, %v2819_v30  ;;  %v2817_v39 = vsel %vm2810_vm9, %v2814_v46, %v2816_v25  ;;  %v2629_v25 = vsel %vm2624_vm12, %v2626_v4, %v2628_v3  ;;  %v2503_v31 = vld [vmem:[%s5933_s13 + $0x40] sm:$0xff] }
 0x73a   :  { %v2299_v34 = vpop.permute.xlu1 %2298  ;;  %4340 = vmatprep.subr.mxu0 %v4475_v2 }
 0x73b   :  { %4293 = vmatprep.mubr.msk.f32.mxu0 %vm2336_vm10, %v2320_v32  ;;  %v2323_v1 = vmax.f32 %v5538_v59, %v2299_v34  ;;  %4341 = vmatpush3.msra.mxu0 %v2817_v39  ;;  %v2501_v59 = vld [vmem:[%s5933_s13 + $0x30] sm:$0xff]  ;;  %v2721_v32 = vrot.slane %v2504_v26, 6  ;;  %v2524_v34 = vld [vmem:[%s5933_s13 + $0xe8] sm:$0xff] }
 0x73c   :  { %4294 = vmatmul.mubr.msk.f32.gmra.mxu0 %vm2336_vm10, %v2321_v62  ;;  %v2297_v8 = vpop.permute.xlu0 %2296  ;;  %4342 = vmatprep.subr.mxu0 %v4475_v2  ;;  %v2630_v0 = vrot.slane %v2501_v59, 7  ;;  %v2525_v62 = vld [vmem:[%s5933_s13 + $0xf0] sm:$0xff]  ;;  %v2532_v59 = vld [vmem:[%s5933_s13 + $0x128] sm:$0xff] }
 0x73d   :  { %v2322_v22 = vmax.f32 %v2272_v12, %v2297_v8  ;;  %4343 = vmatpush3.msra.mxu0 %v2815_v37  ;;  %v2632_v12 = vrot.slane %v5627_v48, 7  ;;  %v2909_v37 = vrot.slane %v2513_v45, 4  ;;  %v3447_v45 = vld [vmem:[%s5934_s15 + $0x60] sm:$0xff] }
 0x73e   :  { %v2303_v24 = vpop.permute.xlu1 %2302  ;;  %4344 = vmatprep.subr.mxu0 %v4475_v2 }
 0x73f   :  { %4296 = vmatprep.mubr.msk.f32.mxu0 %vm2336_vm10, %v2322_v22  ;;  %v2325_v42 = vmax.f32 %v2275_v5, %v2303_v24  ;;  %4345 = vmatpush3.msra.mxu0 %v2813_v36  ;;  %v2633_v41 = vsel %vm2624_vm12, %v2630_v0, %v2632_v12  ;;  %v3179_v36 = vrot.slane %v5713_v47, 1  ;;  %v2531_v12 = vld [vmem:[%s5933_s13 + $0x120] sm:$0xff]  ;;  %v2912_v52 = vsel %vm2903_vm15, %v2909_v37, %v2911_v27  ;;  %v3442_v27 = vld [vmem:[%s5934_s15 + $0x38] sm:$0xff] }
 0x740   :  { %4297 = vmatmul.mubr.msk.f32.gmra.mxu0 %vm2336_vm10, %v2323_v1  ;;  %v2301_v13 = vpop.permute.xlu0 %2300  ;;  %4360 = vmatprep.subr.mxu0 %v4475_v2 }
 0x741   :  { %v2324_v29 = vmax.f32 %v2274_v58, %v2301_v13  ;;  %v2505_v58 = vld [vmem:[%s5933_s13 + $0x50] sm:$0xff]  ;;  %v2719_v13 = vrot.slane %v2503_v31, 6 }
 0x742   :  { %v2307_v43 = vpop.permute.xlu1 %2306  ;;  %v2723_v20 = vrot.slane %v2505_v58, 6 }
 0x743   :  { %4299 = vmatprep.mubr.msk.f32.mxu0 %vm2336_vm10, %v2324_v29  ;;  %v2327_v44 = vmax.f32 %v2277_v17, %v2307_v43  ;;  %v2631_v17 = vsel %vm2624_vm12, %v2628_v3, %v2630_v0  ;;  %v2523_v29 = vld [vmem:[%s5933_s13 + $0xe0] sm:$0xff]  ;;  %v3182_v43 = vrot.slane %v2524_v34, 1  ;;  %v2722_v33 = vsel %vm2717_vm14, %v2719_v13, %v2721_v32 }
 0x744   :  { %4300 = vmatmul.mubr.msk.f32.gmra.mxu0 %vm2336_vm10, %v2325_v42  ;;  %v2305_v35 = vpop.permute.xlu0 %2304  ;;  %v2726_v1 = vsel %vm2717_vm14, %v2723_v20, %v2725_v54  ;;  %v3184_v42 = vrot.slane %v2525_v62, 1  ;;  %v3180_v46 = vrot.slane %v2523_v29, 1  ;;  %v2907_v0 = vrot.slane %v2512_v49, 4  ;;  %v2520_v54 = vld [vmem:[%s5933_s13 + $0xc8] sm:$0xff]  ;;  %v3439_v49 = vld [vmem:[%s5934_s15 + $0x20] sm:$0xff] }
 0x745   :  { %v2326_v14 = vmax.f32 %v2276_v18, %v2305_v35  ;;  %v2997_v18 = vrot.slane %v2515_v6, 3  ;;  %v3351_v3 = vrot.slane %v2532_v59, 7  ;;  %v2530_v6 = vld [vmem:[%s5933_s13 + $0x118] sm:$0xff]  ;;  %v3091_v26 = vrot.slane %v2520_v54, 2  ;;  %v3436_v59 = vld [vmem:[%s5934_s15 + $0x8] sm:$0xff] }
 0x746   :  { %v3185_v40 = vsel %vm2539_vm8, %v3182_v43, %v3184_v42  ;;  %v3183_v15 = vsel %vm2539_vm8, %v3180_v46, %v3182_v43  ;;  %v3181_v57 = vsel %vm2539_vm8, %v3179_v36, %v3180_v46  ;;  %v2910_v4 = vsel %vm2903_vm15, %v2907_v0, %v2909_v37  ;;  %v3446_v46 = vld [vmem:[%s5934_s15 + $0x58] sm:$0xff]  ;;  %v3440_v37 = vld [vmem:[%s5934_s15 + $0x28] sm:$0xff]  ;;  %v3437_v36 = vld [vmem:[%s5934_s15 + $0x10] sm:$0xff] }
 0x747   :  { %4302 = vmatprep.mubr.msk.f32.mxu0 %vm2336_vm10, %v2326_v14  ;;  %v3000_v30 = vsel %vm1468_vm5, %v2997_v18, %v2999_v9  ;;  %v2998_v24 = vsel %vm1468_vm5, %v2996_v7, %v2997_v18  ;;  %v2724_v14 = vsel %vm2717_vm14, %v2721_v32, %v2723_v20  ;;  %v2904_v9 = vrot.slane %v5570_v21, 4  ;;  %v2519_v20 = vld [vmem:[%s5933_s13 + $0xc0] sm:$0xff] }
 0x748   :  { %4303 = vmatmul.mubr.msk.f32.gmra.mxu0 %vm2336_vm10, %v2327_v44  ;;  %v2718_v44 = vrot.slane %v5627_v48, 6  ;;  %v2533_v48 = vld [vmem:[%s5933_s13 + $0x130] sm:$0x3f]  ;;  %v3347_v58 = vrot.slane %v2530_v6, 7  ;;  %v3089_v32 = vrot.slane %v2519_v20, 2  ;;  %v3094_v34 = vsel %vm611_vm2, %v3091_v26, %v3093_v19 }
 0x749   :  { %4346 = vmatprep.mubr.msk.f32.mxu0 %vm4478_vm11, %v4475_v2  ;;  %v3353_v38 = vrot.slane %v2533_v48, 7  ;;  %v3435_v48 = vld [vmem:[%s5934_s15] sm:$0xff] }
 0x74a   :  { %v2720_v53 = vsel %vm2717_vm14, %v2718_v44, %v2719_v13  ;;  %v2527_v13 = vld [vmem:[%s5933_s13 + $0x100] sm:$0xff]  ;;  %v3448_v44 = vld [vmem:[%s5934_s15 + $0x68] sm:$0xff] }
 0x7f8   :  { %v4292_v50 = vpop.f32.mrf.mxu0 }
 0x7f9   :  { %v2486_v8 = vmax.f32 %v4292_v50, 0.0 }
 0x7fa   :  { %v2436_v56 = vpop.f32.mrf.mxu0 }
 0x7fb   :  { %v2485_v5 = vmax.f32 %v2436_v56, 0.0  ;;  %v2905_v56 = vrot.slane %v2511_v61, 4 }
 0x7fc   :  { %v4295_v16 = vpop.f32.mrf.mxu0 }
 0x7fd   :  { %v2488_v55 = vmax.f32 %v4295_v16, 0.0  ;;  %4314 = vmatmul.mubr.msk.f32.vlgmr.msra.gmra.mxu1 %vm2535_vm13, %v2485_v5  ;;  %v3349_v5 = vrot.slane %v2531_v12, 7  ;;  %v3354_v16 = vsel %vm2624_vm12, %v3351_v3, %v3353_v38  ;;  %v2908_v21 = vsel %vm2903_vm15, %v2905_v56, %v2907_v0 }
 0x7fe   :  { %4317 = vmatpush3.msk.msra.mxu1 %vm2539_vm8, %v2633_v41  ;;  %4324 = vmatprep.mubr.msk.f32.mxu1 %vm4478_vm11, %v4475_v2  ;;  %v5668_v23 = vpop.f32.mrf.mxu0 }
 0x7ff   :  { %4318 = vmatprep.subr.mxu1 %v4475_v2  ;;  %4347 = vmatmul.mubr.msk.f32.vlgmr.msra.gmra.mxu0 %vm2535_vm13, %v2488_v55  ;;  %v2487_v50 = vmax.f32 %v5668_v23, 0.0  ;;  %v2529_v55 = vld [vmem:[%s5933_s13 + $0x110] sm:$0xff]  ;;  %v3352_v18 = vsel %vm2624_vm12, %v3349_v5, %v3351_v3  ;;  %v2906_v23 = vsel %vm2903_vm15, %v2904_v9, %v2905_v56  ;;  %v3752_v56 = vld [vmem:[%s5935_s14] ss:$0 sm:$0xff] }
 0x800   :  { %4319 = vmatpush3.msra.mxu1 %v2631_v17  ;;  %4361 = vmatpush3.msk.msra.mxu0 %vm2539_vm8, %v3004_v11  ;;  %v4298_v22 = vpop.f32.mrf.mxu0  ;;  %v3095_v11 = vrot.slane %v5713_v47, 2  ;;  %v3445_v47 = vld [vmem:[%s5934_s15 + $0x50] sm:$0xff] }
 0x801   :  { %4320 = vmatprep.subr.mxu1 %v4475_v2  ;;  %4362 = vmatprep.subr.mxu0 %v4475_v2  ;;  %v2490_v35 = vmax.f32 %v4298_v22, 0.0  ;;  %v3092_v22 = vsel %vm611_vm2, %v3089_v32, %v3091_v26 }
 0x802   :  { %4321 = vmatpush3.msra.mxu1 %v2629_v25  ;;  %4363 = vmatpush3.msra.mxu0 %v3002_v60  ;;  %v5718_v39 = vpop.f32.mrf.mxu0  ;;  %v3346_v25 = vrot.slane %v2529_v55, 7  ;;  %v3350_v60 = vsel %vm2624_vm12, %v3347_v58, %v3349_v5 }
 0x803   :  { %4322 = vmatprep.subr.mxu1 %v4475_v2  ;;  %4364 = vmatprep.subr.mxu0 %v4475_v2  ;;  %v2489_v7 = vmax.f32 %v5718_v39, 0.0  ;;  %v3443_v39 = vld [vmem:[%s5934_s15 + $0x40] sm:$0xff] }
 0x804   :  { %4323 = vmatpush3.msra.mxu1 %v2627_v28  ;;  %4365 = vmatpush3.msra.mxu0 %v3000_v30  ;;  %v4301_v51 = vpop.f32.mrf.mxu0  ;;  %v3096_v30 = vsel %vm611_vm2, %v3093_v19, %v3095_v11  ;;  %v3348_v31 = vsel %vm2624_vm12, %v3346_v25, %v3347_v58 }
 0x805   :  { %4325 = vmatmul.mubr.msk.f32.vlgmr.msra.gmra.mxu1 %vm2535_vm13, %v2486_v8  ;;  %4327 = vmatprep.subr.mxu1 %v4475_v2  ;;  %v2492_v41 = vmax.f32 %v4301_v51, 0.0  ;;  %v3088_v8 = vrot.slane %v5638_v63, 2 }
 0x806   :  { %4366 = vmatprep.subr.mxu0 %v4475_v2  ;;  %4328 = vmatpush3.msk.msra.mxu1 %vm2539_vm8, %v2726_v1  ;;  %v2466_v17 = vpop.f32.mrf.mxu0 }
 0x807   :  { %4367 = vmatpush3.msra.mxu0 %v2998_v24  ;;  %4368 = vmatprep.mubr.msk.f32.mxu0 %vm4478_vm11, %v4475_v2  ;;  %v3090_v1 = vsel %vm611_vm2, %v3088_v8, %v3089_v32  ;;  %v2491_v63 = vmax.f32 %v2466_v17, 0.0  ;;  %v2528_v24 = vld [vmem:[%s5933_s13 + $0x108] sm:$0xff]  ;;  %v24_v32 = vstv %s5937_s18 }
 0x808   :  { %4329 = vmatprep.subr.mxu1 %v4475_v2  ;;  %4369 = vmatmul.mubr.msk.f32.vlgmr.msra.gmra.mxu0 %vm2535_vm13, %v2490_v35  ;;  %v4304_v28 = vpop.f32.mrf.mxu0  ;;  %v3450_v35 = vld [vmem:[%s5934_s15 + $0x78] sm:$0xff]  ;;  %25 = vst [vmem:[#allocation2] sm:$0x1] %v24_v32 }
 0x809   :  { %4382 = vmatprep.subr.mxu0 %v4475_v2  ;;  %4330 = vmatpush3.msra.mxu1 %v2724_v14  ;;  %v2494_v62 = vmax.f32 %v4304_v28, 0.0  ;;  %v3449_v14 = vld [vmem:[%s5934_s15 + $0x70] sm:$0xff] }
 0x80a   :  { %4383 = vmatpush3.msk.msra.mxu0 %vm2539_vm8, %v3184_v42  ;;  %4331 = vmatprep.subr.mxu1 %v4475_v2  ;;  %v2476_v29 = vpop.f32.mrf.mxu0  ;;  %v2526_v42 = vld [vmem:[%s5933_s13 + $0xf8] sm:$0xff]  ;;  %v3531_v28 = vld [vmem:[%s5936_s17 + $0x10] sm:$0xf] }
 0x80b   :  { %4384 = vmatprep.subr.mxu0 %v4475_v2  ;;  %4332 = vmatpush3.msra.mxu1 %v2722_v33  ;;  %v2493_v43 = vmax.f32 %v2476_v29, 0.0  ;;  %v3444_v33 = vld [vmem:[%s5934_s15 + $0x48] sm:$0xff] }
 0x80c   :  { %4385 = vmatpush3.msra.mxu0 %v3185_v40  ;;  %4333 = vmatprep.subr.mxu1 %v4475_v2  ;;  %v3441_v40 = vld [vmem:[%s5934_s15 + $0x30] sm:$0xff] }
 0x80d   :  { %4386 = vmatprep.subr.mxu0 %v4475_v2  ;;  %4334 = vmatpush3.msra.mxu1 %v2720_v53  ;;  %v3438_v53 = vld [vmem:[%s5934_s15 + $0x18] sm:$0xff] }
 0x80e   :  { %4335 = vmatprep.mubr.msk.f32.mxu1 %vm4478_vm11, %v4475_v2  ;;  %4387 = vmatpush3.msra.mxu0 %v3183_v15 }
 0x80f   :  { %4336 = vmatmul.mubr.msk.f32.vlgmr.msra.gmra.mxu1 %vm2535_vm13, %v2487_v50  ;;  %4349 = vmatprep.subr.mxu1 %v4475_v2 }
 0x810   :  { %4388 = vmatprep.subr.mxu0 %v4475_v2  ;;  %4350 = vmatpush3.msk.msra.mxu1 %vm2539_vm8, %v2912_v52 }
 0x811   :  { %4389 = vmatpush3.msra.mxu0 %v3181_v57  ;;  %4390 = vmatprep.mubr.msk.f32.mxu0 %vm4478_vm11, %v4475_v2 }
 0x812   :  { %4351 = vmatprep.subr.mxu1 %v4475_v2  ;;  %4391 = vmatmul.mubr.msk.f32.vlgmr.msra.gmra.mxu0 %vm2535_vm13, %v2492_v41 }
 0x813   :  { %4404 = vmatprep.subr.mxu0 %v4475_v2  ;;  %4352 = vmatpush3.msra.mxu1 %v2910_v4 }
 0x814   :  { %4405 = vmatpush3.msk.msra.mxu0 %vm2539_vm8, %v3354_v16  ;;  %4353 = vmatprep.subr.mxu1 %v4475_v2 }
 0x815   :  { %4406 = vmatprep.subr.mxu0 %v4475_v2  ;;  %4354 = vmatpush3.msra.mxu1 %v2908_v21 }
 0x816   :  { %4407 = vmatpush3.msra.mxu0 %v3352_v18  ;;  %4355 = vmatprep.subr.mxu1 %v4475_v2 }
 0x817   :  { %4408 = vmatprep.subr.mxu0 %v4475_v2  ;;  %4356 = vmatpush3.msra.mxu1 %v2906_v23 }
 0x818   :  { %4357 = vmatprep.mubr.msk.f32.mxu1 %vm4478_vm11, %v4475_v2  ;;  %4409 = vmatpush3.msra.mxu0 %v3350_v60 }
 0x819   :  { %4358 = vmatmul.mubr.msk.f32.vlgmr.msra.gmra.mxu1 %vm2535_vm13, %v2489_v7  ;;  %4371 = vmatprep.subr.mxu1 %v4475_v2 }
 0x81a   :  { %4410 = vmatprep.subr.mxu0 %v4475_v2  ;;  %4372 = vmatpush3.msk.msra.mxu1 %vm2539_vm8, %v3096_v30  ;;  %v3530_v30 = vld [vmem:[%s5936_s17 + $0x8] sm:$0xff] }
 0x81b   :  { %4411 = vmatpush3.msra.mxu0 %v3348_v31  ;;  %4412 = vmatprep.mubr.msk.f32.mxu0 %vm4478_vm11, %v4475_v2  ;;  %v3529_v31 = vld [vmem:[%s5936_s17] sm:$0xff] }
 0x81c   :  { %4373 = vmatprep.subr.mxu1 %v4475_v2  ;;  %4413 = vmatmul.mubr.msk.f32.vlgmr.msra.gmra.mxu0 %vm2535_vm13, %v2494_v62  ;;  %v3771_v62 = vld [vmem:[%s5938_s16] ss:$0 sm:$0xff] }
 0x81d   :  { %4374 = vmatpush3.msra.mxu1 %v3094_v34  ;;  %4379 = vmatprep.mubr.msk.f32.mxu1 %vm4478_vm11, %v4475_v2 }
 0x81e   :  { %4375 = vmatprep.subr.mxu1 %v4475_v2  ;;  %4450 = vmatprep.subr.mxu0 %v4475_v2 }
 0x81f   :  { %4376 = vmatpush3.msra.mxu1 %v3092_v22  ;;  %4456 = vmatprep.mubr.msk.f32.mxu0 %vm4478_vm11, %v4475_v2 }
 0x820   :  { %4377 = vmatprep.subr.mxu1 %v4475_v2  ;;  %4451 = vmatpush3.msk.msra.mxu0 %vm2903_vm15, %v3531_v28 }
 0x821   :  { %4378 = vmatpush3.msra.mxu1 %v3090_v1  ;;  %4452 = vmatprep.subr.mxu0 %v4475_v2 }
 0x822   :  { %4380 = vmatmul.mubr.msk.f32.vlgmr.msra.gmra.mxu1 %vm2535_vm13, %v2491_v63  ;;  %4393 = vmatprep.subr.mxu1 %v4475_v2 }
 0x823   :  { %4394 = vmatpush3.msk.msra.mxu1 %vm2539_vm8, %v2529_v55  ;;  %4401 = vmatprep.mubr.msk.f32.mxu1 %vm4478_vm11, %v4475_v2 }
 0x824   :  { %4395 = vmatprep.subr.mxu1 %v4475_v2  ;;  %4453 = vmatpush3.msra.mxu0 %v3530_v30 }
 0x825   :  { %4396 = vmatpush3.msra.mxu1 %v2528_v24  ;;  %4454 = vmatprep.subr.mxu0 %v4475_v2 }
 0x826   :  { %4397 = vmatprep.subr.mxu1 %v4475_v2  ;;  %4455 = vmatpush3.msra.mxu0 %v3529_v31 }
 0x827   :  { %4398 = vmatpush3.msra.mxu1 %v2527_v13 }
 0x828   :  { %4399 = vmatprep.subr.mxu1 %v4475_v2 }
 0x829   :  { %4400 = vmatpush3.msra.mxu1 %v2526_v42 }
 0x82a   :  { %4402 = vmatmul.mubr.msk.f32.vlgmr.msra.gmra.mxu1 %vm2535_vm13, %v2493_v43  ;;  %4415 = vmatprep.subr.mxu1 %v4475_v2 }
 0x82b   :  { %4447 = vmatprep.mubr.msk.f32.mxu1 %vm4478_vm11, %v4475_v2  ;;  %4416 = vmatpush3.msra.mxu1 %v3450_v35 }
 0x82c   :  { %4417 = vmatprep.subr.mxu1 %v4475_v2 }
 0x82d   :  { %4418 = vmatpush3.msra.mxu1 %v3449_v14 }
 0x82e   :  { %4419 = vmatprep.subr.mxu1 %v4475_v2 }
 0x82f   :  { %4420 = vmatpush3.msra.mxu1 %v3448_v44 }
 0x830   :  { %4421 = vmatprep.subr.mxu1 %v4475_v2 }
 0x831   :  { %4422 = vmatpush3.msra.mxu1 %v3447_v45 }
 0x832   :  { %4423 = vmatprep.subr.mxu1 %v4475_v2 }
 0x833   :  { %4424 = vmatpush3.msra.mxu1 %v3446_v46 }
 0x834   :  { %4425 = vmatprep.subr.mxu1 %v4475_v2 }
 0x835   :  { %4426 = vmatpush3.msra.mxu1 %v3445_v47 }
 0x836   :  { %4427 = vmatprep.subr.mxu1 %v4475_v2 }
 0x837   :  { %4428 = vmatpush3.msra.mxu1 %v3444_v33 }
 0x838   :  { %4429 = vmatprep.subr.mxu1 %v4475_v2 }
 0x839   :  { %4430 = vmatpush3.msra.mxu1 %v3443_v39 }
 0x83a   :  { %4431 = vmatprep.subr.mxu1 %v4475_v2 }
 0x83b   :  { %4432 = vmatpush3.msra.mxu1 %v3442_v27 }
 0x83c   :  { %4433 = vmatprep.subr.mxu1 %v4475_v2 }
 0x83d   :  { %4434 = vmatpush3.msra.mxu1 %v3441_v40 }
 0x83e   :  { %4435 = vmatprep.subr.mxu1 %v4475_v2 }
 0x83f   :  { %4436 = vmatpush3.msra.mxu1 %v3440_v37 }
 0x840   :  { %4437 = vmatprep.subr.mxu1 %v4475_v2 }
 0x841   :  { %4438 = vmatpush3.msra.mxu1 %v3439_v49 }
 0x842   :  { %4439 = vmatprep.subr.mxu1 %v4475_v2 }
 0x843   :  { %4440 = vmatpush3.msra.mxu1 %v3438_v53 }
 0x844   :  { %4441 = vmatprep.subr.mxu1 %v4475_v2 }
 0x845   :  { %4442 = vmatpush3.msra.mxu1 %v3437_v36 }
 0x846   :  { %4443 = vmatprep.subr.mxu1 %v4475_v2 }
 0x847   :  { %4444 = vmatpush3.msra.mxu1 %v3436_v59 }
 0x848   :  { %4445 = vmatprep.subr.mxu1 %v4475_v2  ;;  %v3772_v2 = vld [vmem:[#allocation2] ss:$0 sm:$0xff] }
 0x849   :  { %4446 = vmatpush3.msra.mxu1 %v3435_v48 }
 0x8bd   :  { %v2609_v15 = vpop.f32.mrf.mxu1 }
 0x8be   :  { %v2619_v41 = vadd.f32 %v3752_v56, %v2609_v15 }
 0x8bf   :  { %v4315_v61 = vpop.f32.mrf.mxu1  ;;  %v2894_v0 = vpop.f32.mrf.mxu0 }
 0x8c1   :  { %v4348_v12 = vpop.f32.mrf.mxu0 }
 0x8c5   :  { %v2708_v50 = vpop.f32.mrf.mxu1 }
 0x8c6   :  { %v2712_v4 = vadd.f32 %v2708_v50, %v2619_v41 }
 0x8c7   :  { %v4326_v51 = vpop.f32.mrf.mxu1 }
 0x8c8   :  { %v3079_v52 = vpop.f32.mrf.mxu0 }
 0x8ca   :  { %v4370_v3 = vpop.f32.mrf.mxu0 }
 0x8cf   :  { %v2801_v38 = vpop.f32.mrf.mxu1 }
 0x8d0   :  { %v2805_v9 = vadd.f32 %v2801_v38, %v2712_v4 }
 0x8d1   :  { %v4337_v57 = vpop.f32.mrf.mxu1 }
 0x8d2   :  { %v3260_v6 = vpop.f32.mrf.mxu0  ;;  %v2898_v55 = vadd.f32 %v2894_v0, %v2805_v9 }
 0x8d4   :  { %v4392_v5 = vpop.f32.mrf.mxu0 }
 0x8d9   :  { %v2987_v10 = vpop.f32.mrf.mxu1 }
 0x8da   :  { %v2991_v17 = vadd.f32 %v2987_v10, %v2898_v55 }
 0x8db   :  { %v4359_v16 = vpop.f32.mrf.mxu1 }
 0x8dc   :  { %v3429_v58 = vpop.f32.mrf.mxu0  ;;  %v3083_v18 = vadd.f32 %v3079_v52, %v2991_v17 }
 0x8de   :  { %v4414_v21 = vpop.f32.mrf.mxu0 }
 0x8e2   :  { %v3171_v11 = vpop.f32.mrf.mxu1 }
 0x8e3   :  { %v3175_v54 = vadd.f32 %v3171_v11, %v3083_v18 }
 0x8e4   :  { %v4381_v19 = vpop.f32.mrf.mxu1 }
 0x8e5   :  { %v3264_v23 = vadd.f32 %v3260_v6, %v3175_v54 }
 0x8ea   :  { %v3337_v25 = vpop.f32.mrf.mxu1 }
 0x8eb   :  { %v3341_v60 = vadd.f32 %v3337_v25, %v3264_v23 }
 0x8ec   :  { %v4403_v20 = vpop.f32.mrf.mxu1 }
 0x8ed   :  { %v3433_v26 = vadd.f32 %v3429_v58, %v3341_v60 }
 0x8ef   :  { %v3434_v7 = vmax.f32 %v3433_v26, 0.0 }
 0x8f1   :  { %4448 = vmatmul.mubr.f32.vlgmr.msra.gmra.mxu1 %v3434_v7 }
 0x9b1   :  { %v3524_v34 = vpop.f32.mrf.mxu1 }
 0x9b2   :  { %v3525_v8 = vadd.f32 %v3771_v62, %v3524_v34 }
 0x9b3   :  { %v4449_v22 = vpop.f32.mrf.mxu1 }
 0x9b4   :  { %v3528_v1 = vmax.f32 %v3525_v8, 0.0 }
 0x9b6   :  { %4457 = vmatmul.mubr.msk.f32.vlgmr.msra.gmra.mxu0 %vm3539_vm0, %v3528_v1 }
 0xa76   :  { %v3612_v63 = vpop.f32.mrf.mxu0 }
 0xa77   :  { %v3613_v24 = vadd.f32 %v3772_v2, %v3612_v63 }
 0xa78   :  { %v4458_v13 = vpop.f32.mrf.mxu0 }
 0xa79   :  { %3617 = vst.msk [vmem:[%s5939_s19] sm:$0xff] %vm3616_vm1, %v3613_v24 }

</bundles_post_ra>
